<compile_context>
chip_gen: v5e
topology: v5e:2x2
jax: 0.10.0
libtpu: 0.0.40
codegen_flags: <defaults>
</compile_context>

<pallas_src>
import functools
import math

import jax
import jax.numpy as jnp
from jax.experimental import pallas as pl
from jax.experimental.pallas import tpu as pltpu


def _graph_block_kernel(gx_ref, gadj_ref, tok_ref, tokw_ref, toksum_ref,
                        wg_ref, wa_ref, ba_ref, out_ref,
                        *, cross_thr, inv_total_nodes):
    # gx_ref    : [BB, N, D]  bf16 node features for a block of BB graphs
    # gadj_ref  : [BB, N, N]  bf16 adjacency, adj[b, src, dst] in {0, 1} (UNtransposed)
    # tok_ref   : [T, D]      bf16 prompt tokens (shared)
    # tokw_ref  : [T, H]      bf16 precomputed tokens @ W
    # toksum_ref: [1, H]      f32 precomputed sum of token node embeddings
    # wg_ref    : [D, H]      bf16 GNN weight
    # wa_ref    : [H, Cpad]   f32 answering weight, class dim padded to 128 lanes
    # ba_ref    : [1, Cpad]   f32 answering bias, padded lanes = -1e30
    # out_ref   : [BB, Cpad]  f32 softmax probabilities (lane-dense store)
    gx = gx_ref[...]                      # [BB, N, D] bf16
    adj = gadj_ref[...]                   # [BB, N, N] bf16
    tok = tok_ref[...]                    # [T, D] bf16
    tok_w = tokw_ref[...]                 # [T, H] bf16
    h_tok_sum = toksum_ref[...]           # [1, H] f32

    BB, N, D = gx.shape
    H = tok_w.shape[1]

    # graph->graph neighbor aggregation on RAW features, contracting the src axis of the
    # untransposed adjacency directly (no transpose anywhere):
    #   agg[b, dst, :] = sum_src adj[b, src, dst] * gx[b, src, :]
    agg = jax.lax.dot_general(
        adj, gx, dimension_numbers=(((1,), (1,)), ((0,), (0,))),
        preferred_element_type=jnp.float32)                    # [BB, N, D] f32

    # Fold self + incoming-neighbor features before the projection (W is linear:
    # W x_v + sum_u W x_u == W (x_v + sum_u x_u)) -> one fused [BB*N, D]@[D, H] matmul.
    x_tot = (gx.astype(jnp.float32) + agg).astype(jnp.bfloat16)

    gx2 = gx.reshape(BB * N, D)                                # flattened shared-RHS matmuls
    xt2 = x_tot.reshape(BB * N, D)

    # cross adjacency (token -> graph-node edges), produced directly as [BB*N, T];
    # monotone sigmoid => threshold raw dot products against logit(cross_prune).
    cross_logit = jax.lax.dot_general(
        gx2, tok, dimension_numbers=(((1,), (1,)), ((), ())),
        preferred_element_type=jnp.float32)                    # [BB*N, T]
    a_cross = (cross_logit >= cross_thr).astype(jnp.bfloat16)  # unweighted edges, exact in bf16

    msg_tok = jnp.dot(a_cross, tok_w,
                      preferred_element_type=jnp.float32)      # [BB*N, H]
    proj = jnp.dot(xt2, wg_ref[...],
                   preferred_element_type=jnp.float32)         # [BB*N, H]
    h_gx = jax.nn.relu(proj + msg_tok).reshape(BB, N, H)

    # mean pool over all (token + graph) prompted nodes -> [BB, H]
    emb = (h_tok_sum + jnp.sum(h_gx, axis=1)) * inv_total_nodes

    # answering head: Linear + Softmax, lane-dense padded class dim
    logits = jnp.dot(emb, wa_ref[...],
                     preferred_element_type=jnp.float32) + ba_ref[...]   # [BB, Cpad]
    z = logits - jnp.max(logits, axis=-1, keepdims=True)
    e = jnp.exp(z)                                             # padded lanes underflow to exactly 0
    out_ref[...] = e * pl.reciprocal(jnp.sum(e, axis=-1, keepdims=True), approx=True)


def _logit(p):
    return float(math.log(p / (1.0 - p)))


def front_and_head_forward(tokens, gx, gadj, w_gnn, w_ans, b_ans,
                           *, inner_prune=0.3, cross_prune=0.1, block_b=None):
    """Full FrontAndHead forward over a batch of B dense graphs.

    tokens: [T, D]    prompt tokens
    gx:     [B, N, D] node features per graph
    gadj:   [B, N, N] binary adjacency per graph (adj[src, dst] = 1 iff edge src->dst)
    w_gnn:  [D, H]    synthetic GNN weight
    w_ans:  [H, C]    answering linear weight
    b_ans:  [1, C]    answering linear bias
    returns [B, C] softmax probabilities
    """
    tokens = tokens.astype(jnp.float32)
    w_gnn = w_gnn.astype(jnp.float32)
    w_ans = w_ans.astype(jnp.float32)
    b_ans = b_ans.astype(jnp.float32)

    T, D = tokens.shape
    B, N, _ = gx.shape
    H = w_gnn.shape[1]
    C = w_ans.shape[1]
    C_pad = ((C + 127) // 128) * 128

    inner_thr = _logit(inner_prune)
    cross_thr = _logit(cross_prune)

    # --- token prelude: batch-invariant, KB-scale -> plain XLA (no extra kernel launch) ---
    tok_w = tokens @ w_gnn                                        # [T, H]
    inner_logit = tokens @ tokens.T                               # [T, T], symmetric
    a_inner = (inner_logit >= inner_thr).astype(jnp.float32)      # unweighted inner edges (incl. self-loops)
    # Cross edges are directed token -> graph-node, so tokens only receive messages from
    # other tokens: token-side embeddings are batch-invariant and hoisted here.
    h_tok = jax.nn.relu(tok_w + a_inner @ tok_w)
    h_tok_sum = jnp.sum(h_tok, axis=0, keepdims=True)             # [1, H] f32

    # --- bf16 MXU operands (0/1 adjacency exact in bf16; portable to v5e/v6e/v7x) ---
    gx_bf = gx.astype(jnp.bfloat16)
    gadj_bf = gadj.astype(jnp.bfloat16)
    tok_bf = tokens.astype(jnp.bfloat16)
    tokw_bf = tok_w.astype(jnp.bfloat16)
    wg_bf = w_gnn.astype(jnp.bfloat16)

    # lane-dense answering head: pad class dim to 128 lanes; padded logits = -1e30 (f32) -> exp == 0
    w_ans_p = jnp.zeros((H, C_pad), jnp.float32).at[:, :C].set(w_ans)
    b_ans_p = jnp.full((1, C_pad), -1e30, jnp.float32).at[:, :C].set(b_ans)

    # --- graph block size: as large as the (v7x-safe) VMEM budget allows, grid kept even
    #     when possible so the "parallel" axis can shard across 2 TensorCores. Output block's
    #     leading dim must be a multiple of 8 (or equal B) for the (8, 128) layout rule. ---
    if block_b is None:
        per_graph = (2 * 2 * (N * D + N * N)                      # double-buffered bf16 block inputs
                     + 4 * (2 * N * D + 2 * N * T + 3 * N * H))   # f32 in-kernel intermediates
        budget = 12 * 1024 * 1024
        cap = int(max(1, min(512, budget // per_graph, B)))
        cands = [bb for bb in range(1, cap + 1)
                 if B % bb == 0 and (bb % 8 == 0 or bb == B)]
        if not cands:  # fall back to any legal divisor (e.g. tiny or prime B)
            cands = [bb for bb in range(1, B + 1)
                     if B % bb == 0 and (bb % 8 == 0 or bb == B)]
        even_grid = [bb for bb in cands if (B // bb) % 2 == 0]
        block_b = max(even_grid) if even_grid else max(cands)
    assert B % block_b == 0, "batch must be divisible by the graph block size"

    kernel = functools.partial(_graph_block_kernel,
                               cross_thr=cross_thr,
                               inv_total_nodes=1.0 / float(T + N))

    out_padded = pl.pallas_call(
        kernel,
        out_shape=jax.ShapeDtypeStruct((B, C_pad), jnp.float32),
        grid_spec=pltpu.PrefetchScalarGridSpec(
            num_scalar_prefetch=0,
            grid=(B // block_b,),
            in_specs=[
                pl.BlockSpec((block_b, N, D), lambda i: (i, 0, 0)),   # graph block features
                pl.BlockSpec((block_b, N, N), lambda i: (i, 0, 0)),   # graph block adjacency
                pl.BlockSpec((T, D), lambda i: (0, 0)),               # tokens (shared)
                pl.BlockSpec((T, H), lambda i: (0, 0)),               # tok @ W (shared)
                pl.BlockSpec((1, H), lambda i: (0, 0)),               # token embedding sum
                pl.BlockSpec((D, H), lambda i: (0, 0)),               # GNN weight
                pl.BlockSpec((H, C_pad), lambda i: (0, 0)),           # answering weight (padded)
                pl.BlockSpec((1, C_pad), lambda i: (0, 0)),           # answering bias (padded)
            ],
            out_specs=pl.BlockSpec((block_b, C_pad), lambda i: (i, 0)),
        ),
        compiler_params=pltpu.CompilerParams(
            dimension_semantics=("parallel",),
            vmem_limit_bytes=32 * 1024 * 1024),
    )(gx_bf, gadj_bf, tok_bf, tokw_bf, h_tok_sum, wg_bf, w_ans_p, b_ans_p)

    return out_padded[:, :C]


def _kaiming_uniform(key, shape, a=0.01):
    # torch.nn.init.kaiming_uniform_(mode='fan_in', nonlinearity='leaky_relu')
    fan_in = shape[1]
    gain = (2.0 / (1.0 + a * a)) ** 0.5
    bound = gain * (3.0 / fan_in) ** 0.5
    return jax.random.uniform(key, shape, jnp.float32, -bound, bound)


if __name__ == "__main__":
    # Small deterministic configuration (B=64 graphs of 16 nodes -> block_b=32, grid=2).
    B = 64           # graphs in the batch
    N = 16           # nodes per graph
    input_dim = 32   # token_dim / node feature dim
    hid_dim = 16
    num_classes = 2
    token_num = 8
    inner_prune = 0.3
    cross_prune = 0.1

    key = jax.random.PRNGKey(0)
    k_tok, k_gx, k_adj, k_wg, k_wa, k_ba = jax.random.split(key, 6)

    # FrontAndHead parameters (deterministic synthetic init).
    tokens = _kaiming_uniform(k_tok, (token_num, input_dim))                 # HeavyPrompt tokens
    bound = 1.0 / hid_dim ** 0.5
    w_ans = jax.random.uniform(k_wa, (hid_dim, num_classes), jnp.float32, -bound, bound)
    b_ans = jax.random.uniform(k_ba, (1, num_classes), jnp.float32, -bound, bound)
    # Synthetic GNN weight (the original module takes `gnn` as an external argument).
    w_gnn = jax.random.normal(k_wg, (input_dim, hid_dim), jnp.float32) * (1.0 / input_dim ** 0.5)

    # Example graph batch inputs.
    gx = jax.random.normal(k_gx, (B, N, input_dim), jnp.float32)
    gadj = jax.random.bernoulli(k_adj, 0.25, (B, N, N)).astype(jnp.float32)

    out = front_and_head_forward(tokens, gx, gadj, w_gnn, w_ans, b_ans,
                                 inner_prune=inner_prune, cross_prune=cross_prune)
    out = jax.block_until_ready(out)

    assert out.shape == (B, num_classes)
    assert bool(jnp.all(jnp.isfinite(out)))
    assert bool(jnp.all(out >= 0.0))
    # rows of softmax sum to ~1 (approx EUP reciprocal in the epilogue -> loose tolerance)
    assert bool(jnp.all(jnp.abs(jnp.sum(out, axis=1) - 1.0) < 5e-3))
    print("KERNEL_OK")
</pallas_src>

<mosaic_0001>
module attributes {stable_mosaic.version = 11 : i64} {
  func.func @_graph_block_kernel(%arg0: i32, %arg1: memref<32x16x32xbf16, #tpu.memory_space<vmem>>, %arg2: memref<32x16x16xbf16, #tpu.memory_space<vmem>>, %arg3: memref<8x32xbf16, #tpu.memory_space<vmem>>, %arg4: memref<8x16xbf16, #tpu.memory_space<vmem>>, %arg5: memref<1x16xf32, #tpu.memory_space<vmem>>, %arg6: memref<32x16xbf16, #tpu.memory_space<vmem>>, %arg7: memref<16x128xf32, #tpu.memory_space<vmem>>, %arg8: memref<1x128xf32, #tpu.memory_space<vmem>>, %arg9: memref<32x128xf32, #tpu.memory_space<vmem>>) attributes {dimension_semantics = [#tpu.dimension_semantics<parallel>], iteration_bounds = array<i64: 2>, scalar_prefetch = 0 : i64, scratch_operands = 0 : i64, tpu.core_type = #tpu.core_type<tc>, window_params = [{transform_indices = @transform_0, window_bounds = array<i64: 32, 16, 32>}, {transform_indices = @transform_1, window_bounds = array<i64: 32, 16, 16>}, {pipeline_mode = #tpu.pipeline_mode<synchronous>, transform_indices = @transform_2, window_bounds = array<i64: 8, 32>}, {pipeline_mode = #tpu.pipeline_mode<synchronous>, transform_indices = @transform_3, window_bounds = array<i64: 8, 16>}, {pipeline_mode = #tpu.pipeline_mode<synchronous>, transform_indices = @transform_4, window_bounds = array<i64: 1, 16>}, {pipeline_mode = #tpu.pipeline_mode<synchronous>, transform_indices = @transform_5, window_bounds = array<i64: 32, 16>}, {pipeline_mode = #tpu.pipeline_mode<synchronous>, transform_indices = @transform_6, window_bounds = array<i64: 16, 128>}, {pipeline_mode = #tpu.pipeline_mode<synchronous>, transform_indices = @transform_7, window_bounds = array<i64: 1, 128>}, {transform_indices = @transform_8, window_bounds = array<i64: 32, 128>}]} {
    %c0 = arith.constant 0 : index
    %c0_0 = arith.constant 0 : index
    %c0_1 = arith.constant 0 : index
    %0 = vector.load %arg1[%c0, %c0_0, %c0_1] : memref<32x16x32xbf16, #tpu.memory_space<vmem>>, vector<32x16x32xbf16>
    %c0_2 = arith.constant 0 : index
    %c0_3 = arith.constant 0 : index
    %c0_4 = arith.constant 0 : index
    %1 = vector.load %arg2[%c0_2, %c0_3, %c0_4] : memref<32x16x16xbf16, #tpu.memory_space<vmem>>, vector<32x16x16xbf16>
    %c0_5 = arith.constant 0 : index
    %c0_6 = arith.constant 0 : index
    %2 = vector.load %arg3[%c0_5, %c0_6] : memref<8x32xbf16, #tpu.memory_space<vmem>>, vector<8x32xbf16>
    %c0_7 = arith.constant 0 : index
    %c0_8 = arith.constant 0 : index
    %3 = vector.load %arg4[%c0_7, %c0_8] : memref<8x16xbf16, #tpu.memory_space<vmem>>, vector<8x16xbf16>
    %c0_9 = arith.constant 0 : index
    %c0_10 = arith.constant 0 : index
    %4 = vector.load %arg5[%c0_9, %c0_10] : memref<1x16xf32, #tpu.memory_space<vmem>>, vector<1x16xf32>
    %cst = arith.constant dense<0.000000e+00> : vector<32x16x32xf32>
    %5 = tpu.matmul %1, %0, %cst {dimension_numbers = #tpu.dot_dimension_numbers<[1], [1], [2], [2], [0, 0, 0, 2, 1, 2], [0], [0]>} : vector<32x16x16xbf16>, vector<32x16x32xbf16>, vector<32x16x32xf32> -> vector<32x16x32xf32>
    %6 = arith.extf %0 : vector<32x16x32xbf16> to vector<32x16x32xf32>
    %7 = arith.addf %6, %5 : vector<32x16x32xf32>
    %8 = arith.truncf %7 : vector<32x16x32xf32> to vector<32x16x32xbf16>
    %9 = vector.shape_cast %0 : vector<32x16x32xbf16> to vector<512x32xbf16>
    %10 = vector.shape_cast %8 : vector<32x16x32xbf16> to vector<512x32xbf16>
    %cst_11 = arith.constant dense<0.000000e+00> : vector<512x8xf32>
    %11 = tpu.matmul %9, %2, %cst_11 {dimension_numbers = #tpu.dot_dimension_numbers<[1], [1], [0], [0], [0, 0, 1, 0], [], []>} : vector<512x32xbf16>, vector<8x32xbf16>, vector<512x8xf32> -> vector<512x8xf32>
    %cst_12 = arith.constant -2.19722462 : f32
    %12 = vector.broadcast %cst_12 : f32 to vector<512x8xf32>
    %13 = arith.cmpf oge, %11, %12 : vector<512x8xf32>
    %14 = arith.extui %13 : vector<512x8xi1> to vector<512x8xi32>
    %15 = arith.sitofp %14 : vector<512x8xi32> to vector<512x8xf32>
    %16 = arith.truncf %15 : vector<512x8xf32> to vector<512x8xbf16>
    %cst_13 = arith.constant dense<0.000000e+00> : vector<512x16xf32>
    %17 = tpu.matmul %16, %3, %cst_13 {dimension_numbers = #tpu.dot_dimension_numbers<[1], [0], [0], [1], [0, 0, 1, 1], [], []>} : vector<512x8xbf16>, vector<8x16xbf16>, vector<512x16xf32> -> vector<512x16xf32>
    %c0_14 = arith.constant 0 : index
    %c0_15 = arith.constant 0 : index
    %18 = vector.load %arg6[%c0_14, %c0_15] : memref<32x16xbf16, #tpu.memory_space<vmem>>, vector<32x16xbf16>
    %cst_16 = arith.constant dense<0.000000e+00> : vector<512x16xf32>
    %19 = tpu.matmul %10, %18, %cst_16 {dimension_numbers = #tpu.dot_dimension_numbers<[1], [0], [0], [1], [0, 0, 1, 1], [], []>} : vector<512x32xbf16>, vector<32x16xbf16>, vector<512x16xf32> -> vector<512x16xf32>
    %20 = arith.addf %19, %17 : vector<512x16xf32>
    %cst_17 = arith.constant 0.000000e+00 : f32
    %21 = vector.broadcast %cst_17 : f32 to vector<512x16xf32>
    %22 = arith.maximumf %20, %21 : vector<512x16xf32>
    %23 = vector.shape_cast %22 : vector<512x16xf32> to vector<32x16x16xf32>
    %cst_18 = arith.constant dense<0.000000e+00> : vector<32x16xf32>
    %24 = vector.multi_reduction <add>, %23, %cst_18 [1] : vector<32x16x16xf32> to vector<32x16xf32>
    %25 = vector.broadcast %4 : vector<1x16xf32> to vector<32x16xf32>
    %26 = arith.addf %25, %24 : vector<32x16xf32>
    %cst_19 = arith.constant 0.0416666679 : f32
    %27 = vector.broadcast %cst_19 : f32 to vector<32x16xf32>
    %28 = arith.mulf %26, %27 : vector<32x16xf32>
    %c0_20 = arith.constant 0 : index
    %c0_21 = arith.constant 0 : index
    %29 = vector.load %arg7[%c0_20, %c0_21] : memref<16x128xf32, #tpu.memory_space<vmem>>, vector<16x128xf32>
    %cst_22 = arith.constant dense<0.000000e+00> : vector<32x128xf32>
    %30 = tpu.matmul %28, %29, %cst_22 {dimension_numbers = #tpu.dot_dimension_numbers<[1], [0], [0], [1], [0, 0, 1, 1], [], []>} : vector<32x16xf32>, vector<16x128xf32>, vector<32x128xf32> -> vector<32x128xf32>
    %c0_23 = arith.constant 0 : index
    %c0_24 = arith.constant 0 : index
    %31 = vector.load %arg8[%c0_23, %c0_24] : memref<1x128xf32, #tpu.memory_space<vmem>>, vector<1x128xf32>
    %32 = vector.broadcast %31 : vector<1x128xf32> to vector<32x128xf32>
    %33 = arith.addf %30, %32 : vector<32x128xf32>
    %cst_25 = arith.constant dense<0xFF800000> : vector<32xf32>
    %34 = vector.multi_reduction <maximumf>, %33, %cst_25 [1] : vector<32x128xf32> to vector<32xf32>
    %35 = vector.shape_cast %34 : vector<32xf32> to vector<32x1xf32>
    %36 = vector.broadcast %35 : vector<32x1xf32> to vector<32x128xf32>
    %37 = arith.subf %33, %36 : vector<32x128xf32>
    %38 = math.exp %37 : vector<32x128xf32>
    %cst_26 = arith.constant dense<0.000000e+00> : vector<32xf32>
    %39 = vector.multi_reduction <add>, %38, %cst_26 [1] : vector<32x128xf32> to vector<32xf32>
    %40 = vector.shape_cast %39 : vector<32xf32> to vector<32x1xf32>
    %41 = tpu.reciprocal %40 {approx = true} : vector<32x1xf32> -> vector<32x1xf32>
    %42 = vector.broadcast %41 : vector<32x1xf32> to vector<32x128xf32>
    %43 = arith.mulf %38, %42 : vector<32x128xf32>
    %c0_27 = arith.constant 0 : index
    %c0_28 = arith.constant 0 : index
    %44 = vector.load %arg9[%c0_27, %c0_28] : memref<32x128xf32, #tpu.memory_space<vmem>>, vector<32x128xf32>
    tpu.vector_store %arg9[%c0_27, %c0_28], %43 {strides = array<i32>} : memref<32x128xf32, #tpu.memory_space<vmem>>, vector<32x128xf32>,
    return
  }
  func.func @transform_0(%arg0: i32) -> (i32, i32, i32) {
    %c0_i32 = arith.constant 0 : i32
    %c0_i32_0 = arith.constant 0 : i32
    %c0_i32_1 = arith.constant 0 : i32
    return %arg0, %c0_i32, %c0_i32_0 : i32, i32, i32
  }
  func.func @transform_1(%arg0: i32) -> (i32, i32, i32) {
    %c0_i32 = arith.constant 0 : i32
    %c0_i32_0 = arith.constant 0 : i32
    %c0_i32_1 = arith.constant 0 : i32
    return %arg0, %c0_i32, %c0_i32_0 : i32, i32, i32
  }
  func.func @transform_2(%arg0: i32) -> (i32, i32) {
    %c0_i32 = arith.constant 0 : i32
    %c0_i32_0 = arith.constant 0 : i32
    %c0_i32_1 = arith.constant 0 : i32
    return %c0_i32, %c0_i32_0 : i32, i32
  }
  func.func @transform_3(%arg0: i32) -> (i32, i32) {
    %c0_i32 = arith.constant 0 : i32
    %c0_i32_0 = arith.constant 0 : i32
    %c0_i32_1 = arith.constant 0 : i32
    return %c0_i32, %c0_i32_0 : i32, i32
  }
  func.func @transform_4(%arg0: i32) -> (i32, i32) {
    %c0_i32 = arith.constant 0 : i32
    %c0_i32_0 = arith.constant 0 : i32
    %c0_i32_1 = arith.constant 0 : i32
    return %c0_i32, %c0_i32_0 : i32, i32
  }
  func.func @transform_5(%arg0: i32) -> (i32, i32) {
    %c0_i32 = arith.constant 0 : i32
    %c0_i32_0 = arith.constant 0 : i32
    %c0_i32_1 = arith.constant 0 : i32
    return %c0_i32, %c0_i32_0 : i32, i32
  }
  func.func @transform_6(%arg0: i32) -> (i32, i32) {
    %c0_i32 = arith.constant 0 : i32
    %c0_i32_0 = arith.constant 0 : i32
    %c0_i32_1 = arith.constant 0 : i32
    return %c0_i32, %c0_i32_0 : i32, i32
  }
  func.func @transform_7(%arg0: i32) -> (i32, i32) {
    %c0_i32 = arith.constant 0 : i32
    %c0_i32_0 = arith.constant 0 : i32
    %c0_i32_1 = arith.constant 0 : i32
    return %c0_i32, %c0_i32_0 : i32, i32
  }
  func.func @transform_8(%arg0: i32) -> (i32, i32) {
    %c0_i32 = arith.constant 0 : i32
    %c0_i32_0 = arith.constant 0 : i32
    return %arg0, %c0_i32 : i32, i32
  }
}

</mosaic_0001>

<bundles_post_ra>
// kernel: tpu_custom_call.1
= control target key start
LH: loop header
LB: loop body
LE: loop exit
PB: predicated region body
PF: predicated region fallthrough
CT: control target
= control target key end

     0   :  { %13 = vsyncpa [#allocation3], 0  ;;  %s5714_s0 = inlined_call_operand.vmem [shape: bf16[64,16,32], index: 0, kind: input, shape index: {}]   ;;  %s5715_s1 = inlined_call_operand.vmem [shape: bf16[64,16,16], index: 1, kind: input, shape index: {}]   ;;  %s5716_s2 = inlined_call_operand.vmem [shape: bf16[8,32], index: 2, kind: input, shape index: {}]   ;;  %s5717_s3 = inlined_call_operand.vmem [shape: bf16[8,16], index: 3, kind: input, shape index: {}]   ;;  %s5718_s4 = inlined_call_operand.vmem [shape: f32[1,16], index: 4, kind: input, shape index: {}]   ;;  %s5719_s5 = inlined_call_operand.vmem [shape: bf16[32,16], index: 5, kind: input, shape index: {}]   ;;  %s5720_s6 = inlined_call_operand.vmem [shape: f32[16,128], index: 6, kind: input, shape index: {}]   ;;  %s5721_s7 = inlined_call_operand.vmem [shape: f32[1,128], index: 7, kind: input, shape index: {}]   ;;  %s5722_s8 = inlined_call_operand.hbm [shape: f32[64,128], index: 8, kind: output, shape index: {}]  }
   0x1   :  { %15 = vsyncpa [#allocation3 + $0x1], 0  ;;  %s4680_s27 = smov 0   ;;  %s4682_s28 = smov 0  }
   0x2   :  { %s4684_s29 = smov 0   ;;  %s4686_s30 = smov 0  }
   0x3 LB: > { %s3914_s9 = sadd.s32 4294967295, %s4630_s30   ;;  %s3915_s10 = sadd.s32 4294967294, %s4630_s30   ;;  %s4630_s30 = sphi %s4686_s30, %s5739_s30   ;;  %s4626_s29 = sphi %s4684_s29, %s5738_s29   ;;  %s4622_s28 = sphi %s4682_s28, %s5737_s28   ;;  %s4618_s27 = sphi %s4680_s27, %s5736_s27  }
   0x4   : > { %s4703_s11 = sadd.s32 1, %s4630_s30   ;;  %s206_s12 = sadd.s32 1, %s4626_s29 }
   0x5   : > { %s203_s13 = ssub.s32 %s4630_s30, %s4703_s11  ;;  %p216_p0 = scmp.ne.s32.totalorder %s4626_s29, %s4622_s28 }
   0x6   : > { %p204_p1 = scmp.eq.s32.totalorder %s203_s13, 0  ;;  %p217_p2 = scmp.eq.s32.totalorder %s3914_s9, 1 }
   0x7   : > { %p222_p3 = scmp.ne.s32.totalorder %s4622_s28, %s4618_s27  ;;  %p223_p4 = scmp.eq.s32.totalorder %s3915_s10, 1 }
   0x8   : > { %s4713_s14 = scalar_select %p204_p1, %s4626_s29, %s206_s12  }
   0x9   : > { %p4715_p5 = por %p217_p2, %p216_p0  ;;  %p4719_p6 = por %p223_p4, %p222_p3 }
   0xa   : > { %p3918_p7 = scmp.ge.s32.totalorder %s4630_s30, 1  ;;  %p279_p8 = scmp.lt.s32.totalorder %s4630_s30, 3 }
   0xc   : > { %p280_p9 = pnand %p3918_p7, %p279_p8 }
   0xe   : > { %283 = sbr.rel (%p280_p9) target bundleno = 1388 (0x56c), region = 52 }
  0x13   : > { %s4725_s17 = sshll.u32 %s3914_s9, 5  ;;  %vm495_vm0 = vcmask 130048   ;;  %vm2100_vm1 = vcmask 261120   ;;  %vm2690_vm2 = vcmask 1043456   ;;  %vm2593_vm5 = vcmask 64512   ;;  %s317_s12 = sand.u32 1, %s4622_s28  }
  0x14   : > { %p321_p10 = scmp.lt.s32.totalorder %s4725_s17, 63  ;;  %s3919_s13 = sshll.u32 %s317_s12, 5 }
  0x15   : > { %s3837_s21 = scalar_lea.hbm %s5722_s8, %s4725_s17  ;;  %s3826_s24 = scalar_lea.sflag [#allocation3], %s317_s12 }
  0x16   : > { %s4729_s18 = scalar_select %p321_p10, %s4725_s17, 63 }
  0x17   : > { %s3840_s23 = sshll.u32 %s3837_s21, 4  ;;  %s4588_s17 = scalar_lea.hbm %s5722_s8, 64  ;;  %s3841_s23 = int_to_ptr.hbm [resolvable:$true] %s3840_s23 }
  0x18   : > { %s4391_s19 = sshll.u32 %s4729_s18, 3  ;;  %s5673_s18 = scalar_lea.vmem [#allocation2], %s3919_s13 }
  0x19   : > { %s4737_s22 = scalar_lea.vmem %s5715_s1, %s4391_s19  ;;  %s4766_s25 = scalar_lea.vmem %s5714_s0, %s4391_s19 }
  0x1a   : > { %v4429_v0 = vld [vmem:[%s4737_s22 + $0x20] sm:$0xff]  ;;  %v4426_v8 = vld [vmem:[%s4737_s22 + $0x8] sm:$0xff]  ;;  %v4427_v9 = vld [vmem:[%s4737_s22 + $0x10] sm:$0xff] }
  0x1b   : > { %v4437_v1 = vld [vmem:[%s4737_s22 + $0x60] sm:$0xff]  ;;  %654 = vxpose.xlu0.c.b16.start.end [1/1] (short) (narrow) %v4429_v0, 16  ;;  %v4430_v10 = vld [vmem:[%s4737_s22 + $0x28] sm:$0xff]  ;;  %v4431_v11 = vld [vmem:[%s4737_s22 + $0x30] sm:$0xff] }
  0x1c   : > { %v4445_v2 = vld [vmem:[%s4737_s22 + $0xa0] sm:$0xff]  ;;  %1014 = vxpose.xlu1.c.b16.start.end [1/1] (short) (narrow) %v4437_v1, 16  ;;  %v4428_v12 = vld [vmem:[%s4737_s22 + $0x18] sm:$0xff]  ;;  %v4435_v13 = vld [vmem:[%s4737_s22 + $0x50] sm:$0xff] }
  0x1d   : > { %1374 = vxpose.xlu2.c.b16.start.end [1/1] (short) (narrow) %v4445_v2, 16  ;;  %v4433_v3 = vld [vmem:[%s4737_s22 + $0x40] sm:$0xff]  ;;  %v4434_v14 = vld [vmem:[%s4737_s22 + $0x48] sm:$0xff]  ;;  %v4439_v15 = vld [vmem:[%s4737_s22 + $0x70] sm:$0xff] }
  0x1e   : > { %v4441_v4 = vld [vmem:[%s4737_s22 + $0x80] sm:$0xff]  ;;  %v4432_v16 = vld [vmem:[%s4737_s22 + $0x38] sm:$0xff]  ;;  %v4438_v17 = vld [vmem:[%s4737_s22 + $0x68] sm:$0xff] }
  0x1f   : > { %v4449_v5 = vld [vmem:[%s4737_s22 + $0xc0] sm:$0xff]  ;;  %v4436_v18 = vld [vmem:[%s4737_s22 + $0x58] sm:$0xff]  ;;  %v4443_v19 = vld [vmem:[%s4737_s22 + $0x90] sm:$0xff] }
  0x20   : > { %v4425_v6 = vld [vmem:[%s4737_s22] sm:$0xff]  ;;  %v4442_v20 = vld [vmem:[%s4737_s22 + $0x88] sm:$0xff]  ;;  %v4447_v21 = vld [vmem:[%s4737_s22 + $0xb0] sm:$0xff] }
  0x21   : > { %v4453_v7 = vld [vmem:[%s4737_s22 + $0xe0] sm:$0xff]  ;;  %v4440_v22 = vld [vmem:[%s4737_s22 + $0x78] sm:$0xff]  ;;  %v4446_v23 = vld [vmem:[%s4737_s22 + $0xa8] sm:$0xff] }
  0x22   : > { %v4771_v24 = vld [vmem:[%s4766_s25 + $0x20] sm:$0xff]  ;;  %v4444_v25 = vld [vmem:[%s4737_s22 + $0x98] sm:$0xff]  ;;  %v4451_v26 = vld [vmem:[%s4737_s22 + $0xd0] sm:$0xff] }
  0x23   : > { %686 = vmatpush.bf16.msra.mxu0 %v4771_v24  ;;  %v4450_v27 = vld [vmem:[%s4737_s22 + $0xc8] sm:$0xff]  ;;  %v4455_v28 = vld [vmem:[%s4737_s22 + $0xf0] sm:$0xff]  ;;  %v4448_v29 = vld [vmem:[%s4737_s22 + $0xb8] sm:$0xff] }
  0x24   : > { %v4454_v30 = vld [vmem:[%s4737_s22 + $0xe8] sm:$0xff]  ;;  %v4452_v31 = vld [vmem:[%s4737_s22 + $0xd8] sm:$0xff]  ;;  %v4783_v33 = vld [vmem:[%s4766_s25 + $0x40] sm:$0xff] }
  0x25   : > { %v4456_v32 = vld [vmem:[%s4737_s22 + $0xf8] sm:$0xff]  ;;  %v4787_v34 = vld [vmem:[%s4766_s25] sm:$0xff]  ;;  %v4803_v41 = vld [vmem:[%s4766_s25 + $0x10] sm:$0xff]  ;;  %s3838_s22 = sshll.u32 %s5673_s18, 4  ;;  %s3839_s22 = int_to_ptr.vmem [resolvable:$true] %s3838_s22 }
  0x26   : > { %506 = vmatpush.bf16.msra.mxu3 %v4787_v34  ;;  %v4791_v35 = vld [vmem:[%s4766_s25 + $0x60] sm:$0xff]  ;;  %v4796_v37 = vld [vmem:[%s4766_s25 + $0x18] sm:$0xff]  ;;  %v4807_v42 = vld [vmem:[%s4766_s25 + $0x8] sm:$0xff]  ;;  %596 = vmatpush.bf16.msra.mxu2 %v4803_v41 }
  0x27   : > { %866 = vmatpush.bf16.msrb.mxu0 %v4783_v33  ;;  %v4800_v39 = vld [vmem:[%s4766_s25 + $0x80] sm:$0xff]  ;;  %551 = vmatpush.bf16.msra.mxu1 %v4807_v42  ;;  %v4814_v46 = vld [vmem:[%s4766_s25 + $0x38] sm:$0xff]  ;;  %v4817_v49 = vld [vmem:[%s4766_s25 + $0x30] sm:$0xff] }
  0x28   : > { %v4413_v45 = vld [vmem:[%s4766_s25 + $0xa0] sm:$0xff]  ;;  %v4827_v55 = vld [vmem:[%s4766_s25 + $0x58] sm:$0xff]  ;;  %v4830_v57 = vld [vmem:[%s4766_s25 + $0x50] sm:$0xff] }
  0x29   : > { %v4417_v54 = vld [vmem:[%s4766_s25 + $0xc0] sm:$0xff]  ;;  %v4841_v62 = vld [vmem:[%s4766_s25 + $0x78] sm:$0xff]  ;;  %v4844_v63 = vld [vmem:[%s4766_s25 + $0x70] sm:$0xff] }
  0x2a   : > { %641 = vmatpush.bf16.msrb.mxu3 %v4796_v37  ;;  %776 = vmatpush.bf16.msrb.mxu2 %v4817_v49  ;;  %v4838_v61 = vld [vmem:[%s4766_s25 + $0xe0] sm:$0xff] }
  0x2b   : > { %834 = vxpose.xlu0.c.b16.start.end [1/1] (short) (narrow) %v4433_v3, 16  ;;  %v464_v2 = vld [vmem:[%s5716_s2] sm:$0xf] }
  0x2c   : > { %1194 = vxpose.xlu1.c.b16.start.end [1/1] (short) (narrow) %v4441_v4, 16  ;;  %v4856_v4 = vsel %vm2100_vm1, %v464_v2, 0  ;;  %v360_v2 = vld [vmem:[%s4766_s25 + $0x60] sm:$0xff]  }
  0x2d   : > { %1554 = vxpose.xlu2.c.b16.start.end [1/1] (short) (narrow) %v4449_v5, 16 }
  0x3b   : > { %4507 = vxpose.binary.xlu0.c.b16.start.end [1/2] (short) (narrow) %v4453_v7, %v4425_v6, 16  ;;  %v4412_v6 = vld [vmem:[%s4766_s25 + $0x98] sm:$0xff]  ;;  %v4411_v7 = vld [vmem:[%s4766_s25 + $0x90] sm:$0xff] }
  0x3c   : > { %4510 = vxpose.binary.xlu1.c.b16.start.end [1/2] (short) (narrow) %v4426_v8, %v4427_v9, 16  ;;  %v4863_v8 = vld [vmem:[%s4766_s25 + $0x28] sm:$0xff] }
  0x3d   : > { %4513 = vxpose.binary.xlu2.c.b16.start.end [1/2] (short) (narrow) %v4430_v10, %v4431_v11, 16  ;;  %v4416_v11 = vld [vmem:[%s4766_s25 + $0xb8] sm:$0xff] }
  0x3e   : > { %731 = vmatpush.bf16.msrb.mxu1 %v4863_v8 }
  0x4b   : > { %4516 = vxpose.binary.xlu0.c.b16.start.end [1/2] (short) (narrow) %v4435_v13, %v4428_v12, 16  ;;  %v4415_v12 = vld [vmem:[%s4766_s25 + $0xb0] sm:$0xff] }
  0x4c   : > { %4519 = vxpose.binary.xlu1.c.b16.start.end [1/2] (short) (narrow) %v4439_v15, %v4434_v14, 16  ;;  %v4875_v15 = vld [vmem:[%s4766_s25 + $0x48] sm:$0xff] }
  0x4d   : > { %4522 = vxpose.binary.xlu2.c.b16.start.end [1/2] (short) (narrow) %v4438_v17, %v4432_v16, 16  ;;  %v4878_v17 = vld [vmem:[%s4766_s25 + $0xd8] sm:$0xff] }
  0x5b   : > { %4525 = vxpose.binary.xlu0.c.b16.start.end [1/2] (short) (narrow) %v4436_v18, %v4443_v19, 16  ;;  %v4882_v19 = vld [vmem:[%s4766_s25 + $0xd0] sm:$0xff] }
  0x5c   : > { %4528 = vxpose.binary.xlu1.c.b16.start.end [1/2] (short) (narrow) %v4447_v21, %v4442_v20, 16  ;;  %v344_v21 = vld [vmem:[%s4766_s25 + $0x20] sm:$0xff]  }
  0x5d   : > { %4531 = vxpose.binary.xlu2.c.b16.start.end [1/2] (short) (narrow) %v4446_v23, %v4440_v22, 16  ;;  %v4895_v22 = vld [vmem:[%s4766_s25 + $0x68] sm:$0xff] }
  0x6b   : > { %4534 = vxpose.binary.xlu0.c.b16.start.end [1/2] (short) (narrow) %v4444_v25, %v4451_v26, 16  ;;  %v4898_v26 = vld [vmem:[%s4766_s25 + $0xf8] sm:$0xff] }
  0x6c   : > { %4537 = vxpose.binary.xlu1.c.b16.start.end [1/2] (short) (narrow) %v4455_v28, %v4450_v27, 16  ;;  %v1916_v27 = vunpack.c.l.bf16 %v344_v21  ;;  %v4902_v28 = vld [vmem:[%s4766_s25 + $0xf0] sm:$0xff] }
  0x6d   : > { %4540 = vxpose.binary.xlu2.c.b16.start.end [1/2] (short) (narrow) %v4454_v30, %v4448_v29, 16  ;;  %v1917_v30 = vunpack.c.h.bf16 %v344_v21 }
  0x7b   : > { %1689 = vxpose.xlu0.c.b16.start.end [1/1] (short) (narrow) %v4452_v31, 16 }
  0x7c   : > { %1869 = vxpose.xlu1.c.b16.start.end [1/1] (short) (narrow) %v4456_v32, 16 }
  0xbe   : > { %v1382_v43 = vpop.trf.xlu2 }
  0xc7   : > { %v662_v36 = vpop.trf.xlu0 }
  0xc8   : > { %3970 = vmatmul.msk.bf16.vlgmr.msra.gmra.mxu0 %vm495_vm0, %v662_v36  ;;  %v1022_v38 = vpop.trf.xlu1 }
  0xc9   : > { %1046 = vmatpush.bf16.msra.mxu0 %v4791_v35 }
  0xce   : > { %v1562_v48 = vpop.trf.xlu2 }
  0xd7   : > { %v842_v40 = vpop.trf.xlu0 }
  0xd8   : > { %4006 = vmatmul.msk.bf16.vlgmr.msrb.gmra.mxu0 %vm495_vm0, %v842_v40  ;;  %v1202_v44 = vpop.trf.xlu1 }
  0xd9   : > { %1226 = vmatpush.bf16.msrb.mxu0 %v4800_v39 }
  0xde   : > { %v4514_v53 = vpop.trf.xlu2 }
  0xe6   : > { %v4515_v58 = vpop.trf.xlu2 }
  0xe7   : > { %v4508_v47 = vpop.trf.xlu0 }
  0xe8   : > { %3934 = vmatmul.msk.bf16.vlgmr.msra.gmra.mxu3 %vm495_vm0, %v4508_v47  ;;  %4042 = vmatmul.msk.bf16.vlgmr.msra.gmra.mxu0 %vm495_vm0, %v1022_v38  ;;  %v4511_v50 = vpop.trf.xlu1  ;;  %v4926_v47 = vld [vmem:[%s4766_s25 + $0x88] sm:$0xff] }
  0xe9   : > { %1406 = vmatpush.bf16.msra.mxu0 %v4413_v45  ;;  %3952 = vmatmul.msk.bf16.vlgmr.msra.gmra.mxu2 %vm495_vm0, %v4511_v50 }
  0xea   : > { %821 = vmatpush.bf16.msra.mxu3 %v4814_v46  ;;  %956 = vmatpush.bf16.msra.mxu2 %v4830_v57 }
  0xee   : > { %v4523_v60 = vpop.trf.xlu2 }
  0xef   : > { %v4509_v51 = vpop.trf.xlu0 }
  0xf0   : > { %v4512_v52 = vpop.trf.xlu1 }
  0xf1   : > { %3943 = vmatmul.msk.bf16.vlgmr.msra.gmra.mxu1 %vm495_vm0, %v4512_v52  ;;  %v4933_v52 = vld [vmem:[%s5719_s5] sm:$0xff] }
  0xf2   : > { %911 = vmatpush.bf16.msra.mxu1 %v4875_v15 }
  0xf6   : > { %v4524_v9 = vpop.trf.xlu2 }
  0xf7   : > { %v4517_v56 = vpop.trf.xlu0 }
  0xf8   : > { %3961 = vmatmul.msk.bf16.vlgmr.msrb.gmra.mxu3 %vm495_vm0, %v4517_v56  ;;  %4078 = vmatmul.msk.bf16.vlgmr.msrb.gmra.mxu0 %vm495_vm0, %v1202_v44  ;;  %v4520_v1 = vpop.trf.xlu1  ;;  %v4921_v44 = vld [vmem:[%s5719_s5 + $0x8] sm:$0xff] }
  0xf9   : > { %1586 = vmatpush.bf16.msrb.mxu0 %v4417_v54  ;;  %3988 = vmatmul.msk.bf16.vlgmr.msrb.gmra.mxu2 %vm495_vm0, %v4514_v53 }
  0xfa   : > { %1001 = vmatpush.bf16.msrb.mxu3 %v4827_v55  ;;  %1136 = vmatpush.bf16.msrb.mxu2 %v4844_v63 }
  0xfe   : > { %v4532_v10 = vpop.trf.xlu2 }
  0xff   : > { %v4518_v59 = vpop.trf.xlu0 }
 0x100   : > { %v4521_v5 = vpop.trf.xlu1 }
 0x101   : > { %3979 = vmatmul.msk.bf16.vlgmr.msrb.gmra.mxu1 %vm495_vm0, %v4515_v58 }
 0x102   : > { %1091 = vmatpush.bf16.msrb.mxu1 %v4895_v22 }
 0x106   : > { %v4891_v20 = vpop.trf.xlu2 }
 0x107   : > { %v4526_v0 = vpop.trf.xlu0 }
 0x108   : > { %3997 = vmatmul.msk.bf16.vlgmr.msra.gmra.mxu3 %vm495_vm0, %v4523_v60  ;;  %4114 = vmatmul.msk.bf16.vlgmr.msra.gmra.mxu0 %vm495_vm0, %v1382_v43  ;;  %v4529_v14 = vpop.trf.xlu1  ;;  %v352_v43 = vld [vmem:[%s4766_s25 + $0x40] sm:$0xff]  }
 0x109   : > { %1766 = vmatpush.bf16.msra.mxu0 %v4838_v61  ;;  %4024 = vmatmul.msk.bf16.vlgmr.msra.gmra.mxu2 %vm495_vm0, %v4518_v59  ;;  %v1925_v56 = vunpack.c.h.bf16 %v352_v43 }
 0x10a   : > { %1181 = vmatpush.bf16.msra.mxu3 %v4841_v62  ;;  %1316 = vmatpush.bf16.msra.mxu2 %v4411_v7  ;;  %v4418_v7 = vld [vmem:[%s4766_s25 + $0xc8] sm:$0xff] }
 0x10e   : > { %v4541_v25 = vpop.trf.xlu2 }
 0x10f   : > { %v4527_v3 = vpop.trf.xlu0 }
 0x110   : > { %v4530_v18 = vpop.trf.xlu1 }
 0x111   : > { %4015 = vmatmul.msk.bf16.vlgmr.msra.gmra.mxu1 %vm495_vm0, %v4520_v1 }
 0x112   : > { %1271 = vmatpush.bf16.msra.mxu1 %v4926_v47 }
 0x117   : > { %v4535_v13 = vpop.trf.xlu0 }
 0x118   : > { %4033 = vmatmul.msk.bf16.vlgmr.msrb.gmra.mxu3 %vm495_vm0, %v4527_v3  ;;  %4150 = vmatmul.msk.bf16.vlgmr.msrb.gmra.mxu0 %vm495_vm0, %v1562_v48  ;;  %v4911_v36 = vpop.trf.xlu1 }
 0x119   : > { %2207 = vmatpush.bf16.xpose.msrb.mxu0 %v4856_v4  ;;  %4060 = vmatmul.msk.bf16.vlgmr.msrb.gmra.mxu2 %vm495_vm0, %v4521_v5 }
 0x11a   : > { %1361 = vmatpush.bf16.msrb.mxu3 %v4412_v6  ;;  %1496 = vmatpush.bf16.msrb.mxu2 %v4415_v12 }
 0x11f   : > { %v4536_v16 = vpop.trf.xlu0 }
 0x120   : > { %v4539_v53 = vpop.trf.xlu1 }
 0x121   : > { %4051 = vmatmul.msk.bf16.vlgmr.msrb.gmra.mxu1 %vm495_vm0, %v4524_v9  ;;  %v1932_v9 = vunpack.c.l.bf16 %v360_v2 }
 0x127   : > { %v1697_v50 = vpop.trf.xlu0 }
 0x128   : > { %4069 = vmatmul.msk.bf16.vlgmr.msra.gmra.mxu3 %vm495_vm0, %v4532_v10  ;;  %4186 = vmatmul.msk.bf16.vlgmr.msra.gmra.mxu0 %vm495_vm0, %v4509_v51  ;;  %v1924_v51 = vunpack.c.l.bf16 %v352_v43  ;;  %v1877_v6 = vpop.trf.xlu1  ;;  %v336_v10 = vld [vmem:[%s4766_s25] sm:$0xff]  }
 0x129   : > { %4096 = vmatmul.msk.bf16.vlgmr.msra.gmra.mxu2 %vm495_vm0, %v4526_v0  ;;  %1541 = vmatpush.bf16.msra.mxu3 %v4416_v11  ;;  %v1908_v12 = vunpack.c.l.bf16 %v336_v10 }
 0x12a   : > { %1676 = vmatpush.bf16.msra.mxu2 %v4882_v19 }
 0x131   : > { %4087 = vmatmul.msk.bf16.vlgmr.msra.gmra.mxu1 %vm495_vm0, %v4529_v14 }
 0x138   : > { %4105 = vmatmul.msk.bf16.vlgmr.msrb.gmra.mxu3 %vm495_vm0, %v4536_v16  ;;  %4214 = vmatmul.msk.bf16.vlgmr.msrb.gmra.mxu0 %vm2100_vm1, %v4787_v34 }
 0x139   : > { %4132 = vmatmul.msk.bf16.vlgmr.msrb.gmra.mxu2 %vm495_vm0, %v4530_v18  ;;  %1721 = vmatpush.bf16.msrb.mxu3 %v4878_v17 }
 0x13a   : > { %1856 = vmatpush.bf16.msrb.mxu2 %v4902_v28 }
 0x145   : > { %v688_v23 = vpop.f32.mrf.mxu0 }
 0x146   : > { %v1980_v29 = vadd.f32 %v1916_v27, %v688_v23 }
 0x148   : > { %4141 = vmatmul.msk.bf16.vlgmr.msra.gmra.mxu3 %vm495_vm0, %v4541_v25  ;;  %4215 = vmatmul.msk.bf16.gmra.mxu0 %vm2100_vm1, %v4807_v42  ;;  %v2044_v32 = vpack.c.bf16 %v1980_v29, %v1980_v29 }
 0x149   : > { %4168 = vmatmul.msk.bf16.vlgmr.msra.gmra.mxu2 %vm495_vm0, %v4535_v13  ;;  %1901 = vmatpush.bf16.msra.mxu3 %v4898_v26  ;;  %v1933_v13 = vunpack.c.h.bf16 %v360_v2 }
 0x14a   : > { %v4913_v40 = vunpack.c.l.b16 %v2044_v32  ;;  %3141 = vmatpush.bf16.msra.mxu2 %v4921_v44 }
 0x14d   : > { %v690_v31 = vpop.f32.mrf.mxu0 }
 0x14e   : > { %v1981_v34 = vadd.f32 %v1917_v30, %v690_v31  ;;  %3142 = vmatpush.bf16.msra.mxu2 %v4933_v52  ;;  %v1909_v30 = vunpack.c.h.bf16 %v336_v10 }
 0x150   : > { %v2045_v38 = vpack.c.bf16 %v1981_v34, %v1981_v34 }
 0x152   : > { %v4915_v42 = vunpack.c.l.b16 %v2045_v38  ;;  %v368_v38 = vld [vmem:[%s4766_s25 + $0x80] sm:$0xff]  }
 0x154   : > { %v2999_v45 = vpack.c.b16 %v4915_v42, %v4913_v40 }
 0x155   : > { %v868_v48 = vpop.f32.mrf.mxu0 }
 0x156   : > { %v1988_v54 = vadd.f32 %v1924_v51, %v868_v48  ;;  %v338_v51 = vld [vmem:[%s4766_s25 + $0x8] sm:$0xff]  }
 0x158   : > { %4177 = vmatmul.msk.bf16.vlgmr.msrb.gmra.mxu3 %vm495_vm0, %v1697_v50  ;;  %4216 = vmatmul.msk.bf16.gmra.mxu0 %vm2100_vm1, %v4803_v41  ;;  %v2052_v59 = vpack.c.bf16 %v1988_v54, %v1988_v54 }
 0x159   : > { %4204 = vmatmul.msk.bf16.vlgmr.msrb.gmra.mxu2 %vm495_vm0, %v4539_v53  ;;  %4460 = vmatpush.bf16.xpose.msrb.mxu3 %v4856_v4  ;;  %v4414_v4 = vld [vmem:[%s4766_s25 + $0xa8] sm:$0xff] }
 0x15a   : > { %v4942_v1 = vunpack.c.l.b16 %v2052_v59  ;;  %1451 = vmatpush.bf16.msrb.mxu1 %v4414_v4  ;;  %v1910_v59 = vunpack.c.l.bf16 %v338_v51 }
 0x15d   : > { %v870_v58 = vpop.f32.mrf.mxu0  ;;  %4123 = vmatmul.msk.bf16.vlgmr.msrb.gmra.mxu1 %vm495_vm0, %v4891_v20 }
 0x15e   : > { %v1989_v60 = vadd.f32 %v1925_v56, %v870_v58  ;;  %1631 = vmatpush.bf16.msra.mxu1 %v4418_v7  ;;  %v1940_v56 = vunpack.c.l.bf16 %v368_v38 }
 0x160   : > { %v2053_v0 = vpack.c.bf16 %v1989_v60, %v1989_v60  ;;  %v1911_v60 = vunpack.c.h.bf16 %v338_v51 }
 0x162   : > { %v4944_v41 = vunpack.c.l.b16 %v2053_v0 }
 0x164   : > { %v3003_v3 = vpack.c.b16 %v4944_v41, %v4942_v1 }
 0x165   : > { %v1048_v5 = vpop.f32.mrf.mxu0 }
 0x166   : > { %v1996_v11 = vadd.f32 %v1932_v9, %v1048_v5  ;;  %v1941_v5 = vunpack.c.h.bf16 %v368_v38  ;;  %v4990_v38 = vld [vmem:[%s4766_s25 + $0xe8] sm:$0xff] }
 0x167   : > { %1811 = vmatpush.bf16.msrb.mxu1 %v4990_v38 }
 0x168   : > { %4213 = vmatmul.msk.bf16.vlgmr.msra.gmra.mxu3 %vm495_vm0, %v1877_v6  ;;  %4217 = vmatmul.msk.bf16.gmra.mxu0 %vm2100_vm1, %v4796_v37  ;;  %v2060_v21 = vpack.c.bf16 %v1996_v11, %v1996_v11 }
 0x16a   : > { %v4959_v31 = vunpack.c.l.b16 %v2060_v21 }
 0x16b   : > { %v508_v14 = vpop.f32.mrf.mxu3 }
 0x16c   : > { %v4957_v16 = vpop.f32.mrf.mxu2  ;;  %v1972_v23 = vadd.f32 %v1908_v12, %v508_v14 }
 0x16d   : > { %v1050_v18 = vpop.f32.mrf.mxu0  ;;  %4159 = vmatmul.msk.bf16.vlgmr.msra.gmra.mxu1 %vm495_vm0, %v4911_v36 }
 0x16e   : > { %v1997_v25 = vadd.f32 %v1933_v13, %v1050_v18  ;;  %v553_v27 = vpop.f32.mrf.mxu1  ;;  %v2036_v37 = vpack.c.bf16 %v1972_v23, %v1972_v23 }
 0x16f   : > { %v1974_v9 = vadd.f32 %v1910_v59, %v553_v27 }
 0x170   : > { %v2061_v29 = vpack.c.bf16 %v1997_v25, %v1997_v25  ;;  %v2931_v53 = vunpack.c.l.b16 %v2036_v37  ;;  %v376_v25 = vld [vmem:[%s4766_s25 + $0xa0] sm:$0xff]  }
 0x171   : > { %v2038_v13 = vpack.c.bf16 %v1974_v9, %v1974_v9 }
 0x172   : > { %v4961_v32 = vunpack.c.l.b16 %v2061_v29  ;;  %v356_v29 = vld [vmem:[%s4766_s25 + $0x50] sm:$0xff]  }
 0x173   : > { %v510_v34 = vpop.f32.mrf.mxu3  ;;  %v2933_v27 = vunpack.c.l.b16 %v2038_v13 }
 0x174   : > { %v1973_v43 = vadd.f32 %v1909_v30, %v510_v34  ;;  %v600_v48 = vpop.f32.mrf.mxu2  ;;  %v340_v30 = vld [vmem:[%s4766_s25 + $0x10] sm:$0xff]  }
 0x175   : > { %v1228_v50 = vpop.f32.mrf.mxu0  ;;  %v1912_v51 = vunpack.c.l.bf16 %v340_v30 }
 0x176   : > { %v2037_v54 = vpack.c.bf16 %v1973_v43, %v1973_v43  ;;  %v555_v0 = vpop.f32.mrf.mxu1  ;;  %v2004_v4 = vadd.f32 %v1940_v56, %v1228_v50  ;;  %v1948_v50 = vunpack.c.l.bf16 %v376_v25 }
 0x177   : > { %v1975_v10 = vadd.f32 %v1911_v60, %v555_v0  ;;  %v1949_v0 = vunpack.c.h.bf16 %v376_v25 }
 0x178   : > { %v2932_v58 = vunpack.c.l.b16 %v2037_v54  ;;  %4218 = vmatmul.msk.bf16.gmra.mxu0 %vm2100_vm1, %v4771_v24  ;;  %4239 = vmatmul.msk.bf16.vlgmr.msrb.gmra.mxu3 %vm2100_vm1, %v4418_v7  ;;  %v2068_v11 = vpack.c.bf16 %v2004_v4, %v2004_v4  ;;  %v1913_v54 = vunpack.c.h.bf16 %v340_v30  ;;  %v384_v30 = vld [vmem:[%s4766_s25 + $0xc0] sm:$0xff]  }
 0x179   : > { %v2039_v18 = vpack.c.bf16 %v1975_v10, %v1975_v10 }
 0x17a   : > { %v2995_v2 = vpack.c.b16 %v2932_v58, %v2931_v53  ;;  %v4977_v21 = vunpack.c.l.b16 %v2068_v11  ;;  %v350_v53 = vld [vmem:[%s4766_s25 + $0x38] sm:$0xff]   ;;  %v4542_v58 = vpop.trf.xlu2 }
 0x17b   : > { %v4972_v6 = vpop.f32.mrf.mxu3  ;;  %v2934_v37 = vunpack.c.l.b16 %v2039_v18  ;;  %v1922_v60 = vunpack.c.l.bf16 %v350_v53 }
 0x17c   : > { %4350 = vmatmul.msk.bf16.vlgmr.msra.gmra.mxu2 %vm2100_vm1, %v2995_v2  ;;  %v4975_v24 = vpop.f32.mrf.mxu2  ;;  %v1976_v2 = vadd.f32 %v1912_v51, %v4957_v16 }
 0x17d   : > { %v1230_v7 = vpop.f32.mrf.mxu0  ;;  %v2996_v56 = vpack.c.b16 %v2934_v37, %v2933_v27  ;;  %4195 = vmatmul.msk.bf16.vlgmr.msrb.gmra.mxu1 %vm495_vm0, %v4542_v58 }
 0x17e   : > { %v2005_v12 = vadd.f32 %v1941_v5, %v1230_v7  ;;  %v1977_v5 = vadd.f32 %v1913_v54, %v600_v48  ;;  %v2040_v11 = vpack.c.bf16 %v1976_v2, %v1976_v2  ;;  %v342_v54 = vld [vmem:[%s4766_s25 + $0x18] sm:$0xff]  }
 0x17f   : > { %v358_v2 = vld [vmem:[%s4766_s25 + $0x58] sm:$0xff]  }
 0x180   : > { %v2069_v14 = vpack.c.bf16 %v2005_v12, %v2005_v12  ;;  %v2041_v12 = vpack.c.bf16 %v1977_v5, %v1977_v5  ;;  %v2935_v48 = vunpack.c.l.b16 %v2040_v11  ;;  %v1915_v5 = vunpack.c.h.bf16 %v342_v54 }
 0x181   : > { %v1930_v11 = vunpack.c.l.bf16 %v358_v2 }
 0x182   : > { %v4979_v36 = vunpack.c.l.b16 %v2069_v14  ;;  %v1923_v14 = vunpack.c.h.bf16 %v350_v53  ;;  %v2936_v37 = vunpack.c.l.b16 %v2041_v12  ;;  %v465_v53 = vld [vmem:[%s5717_s3] sm:$0xf]  ;;  %v1957_v12 = vunpack.c.h.bf16 %v384_v30 }
 0x183   : > { %v4981_v23 = vpop.f32.mrf.mxu3  ;;  %v2692_v58 = vsel %vm2690_vm2, %v465_v53, 0 }
 0x184   : > { %v4987_v34 = vpop.f32.mrf.mxu2  ;;  %2701 = vmatpush.bf16.msra.mxu1 %v2692_v58  ;;  %4461 = vmatpush.bf16.msra.mxu3 %v2692_v58  ;;  %v392_v58 = vld [vmem:[%s4766_s25 + $0xe0] sm:$0xff]  }
 0x185   : > { %v1408_v43 = vpop.f32.mrf.mxu0 }
 0x186   : > { %v2012_v59 = vadd.f32 %v1948_v50, %v1408_v43 }
 0x188   : > { %4219 = vmatmul.msk.bf16.gmra.mxu0 %vm2100_vm1, %v4863_v8  ;;  %4240 = vmatmul.msk.bf16.gmra.mxu3 %vm2100_vm1, %v4882_v19  ;;  %v2076_v10 = vpack.c.bf16 %v2012_v59, %v2012_v59 }
 0x189   : > { %4462 = vmatpush.bf16.msrb.mxu3 %v4921_v44 }
 0x18a   : > { %v5003_v18 = vunpack.c.l.b16 %v2076_v10  ;;  %v2997_v10 = vpack.c.b16 %v2936_v37, %v2935_v48 }
 0x18b   : > { %v823_v4 = vpop.f32.mrf.mxu3 }
 0x18c   : > { %4351 = vmatmul.msk.bf16.gmra.mxu2 %vm2100_vm1, %v2996_v56  ;;  %v5001_v9 = vpop.f32.mrf.mxu2  ;;  %v1986_v7 = vadd.f32 %v1922_v60, %v823_v4  ;;  %v1914_v4 = vunpack.c.l.bf16 %v342_v54 }
 0x18d   : > { %v1410_v8 = vpop.f32.mrf.mxu0  ;;  %4463 = vmatpush.bf16.msrb.mxu3 %v4933_v52 }
 0x18e   : > { %v2013_v19 = vadd.f32 %v1949_v0, %v1410_v8  ;;  %v2050_v25 = vpack.c.bf16 %v1986_v7, %v1986_v7  ;;  %v1956_v0 = vunpack.c.l.bf16 %v384_v30  ;;  %v1978_v44 = vadd.f32 %v1914_v4, %v4972_v6 }
 0x18f   : > { %v1931_v30 = vunpack.c.h.bf16 %v358_v2  ;;  %v1964_v2 = vunpack.c.l.bf16 %v392_v58 }
 0x190   : > { %v2077_v13 = vpack.c.bf16 %v2013_v19, %v2013_v19  ;;  %v5016_v59 = vunpack.c.l.b16 %v2050_v25  ;;  %v2042_v37 = vpack.c.bf16 %v1978_v44, %v1978_v44 }
 0x192   : > { %v5005_v16 = vunpack.c.l.b16 %v2077_v13 }
 0x193   : > { %v825_v27 = vpop.f32.mrf.mxu3 }
 0x194   : > { %v1987_v50 = vadd.f32 %v1923_v14, %v825_v27  ;;  %v5010_v51 = vpop.f32.mrf.mxu2  ;;  %v1979_v14 = vadd.f32 %v1915_v5, %v4981_v23  ;;  %v2937_v23 = vunpack.c.l.b16 %v2042_v37 }
 0x195   : > { %v1588_v56 = vpop.f32.mrf.mxu0 }
 0x196   : > { %v2051_v60 = vpack.c.bf16 %v1987_v50, %v1987_v50  ;;  %v2020_v19 = vadd.f32 %v1956_v0, %v1588_v56  ;;  %v2043_v50 = vpack.c.bf16 %v1979_v14, %v1979_v14 }
 0x198   : > { %v5020_v8 = vunpack.c.l.b16 %v2051_v60  ;;  %4220 = vmatmul.msk.bf16.gmra.mxu0 %vm2100_vm1, %v4817_v49  ;;  %4241 = vmatmul.msk.bf16.gmra.mxu3 %vm2100_vm1, %v4878_v17  ;;  %v2084_v25 = vpack.c.bf16 %v2020_v19, %v2020_v19  ;;  %v2938_v60 = vunpack.c.l.b16 %v2043_v50  ;;  %v733_v50 = vpop.f32.mrf.mxu1 }
 0x19a   : > { %v3002_v7 = vpack.c.b16 %v5020_v8, %v5016_v59  ;;  %v5034_v54 = vunpack.c.l.b16 %v2084_v25 }
 0x19b   : > { %v1003_v13 = vpop.f32.mrf.mxu3 }
 0x19c   : > { %4352 = vmatmul.msk.bf16.gmra.mxu2 %vm2100_vm1, %v2997_v10  ;;  %v5032_v49 = vpop.f32.mrf.mxu2  ;;  %v1994_v48 = vadd.f32 %v1930_v11, %v1003_v13  ;;  %5727 = vst [vmem:[#allocation5_spill] sm:$0xff] %v5034_v54  ;;  %v2998_v13 = vpack.c.b16 %v2938_v60, %v2937_v23  ;;  %v346_v23 = vld [vmem:[%s4766_s25 + $0x28] sm:$0xff]   ;;  %v364_v54 = vld [vmem:[%s4766_s25 + $0x70] sm:$0xff]  }
 0x19d   : > { %v1590_v17 = vpop.f32.mrf.mxu0  ;;  %v1918_v60 = vunpack.c.l.bf16 %v346_v23 }
 0x19e   : > { %v2021_v27 = vadd.f32 %v1957_v12, %v1590_v17  ;;  %v2058_v52 = vpack.c.bf16 %v1994_v48, %v1994_v48  ;;  %v1965_v17 = vunpack.c.h.bf16 %v392_v58 }
 0x1a0   : > { %v2085_v53 = vpack.c.bf16 %v2021_v27, %v2021_v27  ;;  %v5043_v19 = vunpack.c.l.b16 %v2058_v52 }
 0x1a2   : > { %v5036_v56 = vunpack.c.l.b16 %v2085_v53 }
 0x1a3   : > { %v1005_v6 = vpop.f32.mrf.mxu3 }
 0x1a4   : > { %5728 = vst [vmem:[#allocation6_spill] sm:$0xff] %v5036_v56  ;;  %v1995_v4 = vadd.f32 %v1931_v30, %v1005_v6  ;;  %v5041_v10 = vpop.f32.mrf.mxu2 }
 0x1a5   : > { %v1768_v5 = vpop.f32.mrf.mxu0 }
 0x1a6   : > { %v2059_v11 = vpack.c.bf16 %v1995_v4, %v1995_v4  ;;  %v2028_v14 = vadd.f32 %v1964_v2, %v1768_v5  ;;  %v1919_v4 = vunpack.c.h.bf16 %v346_v23  ;;  %v735_v5 = vpop.f32.mrf.mxu1  ;;  %v348_v23 = vld [vmem:[%s4766_s25 + $0x30] sm:$0xff]  }
 0x1a8   : > { %v5045_v12 = vunpack.c.l.b16 %v2059_v11  ;;  %4221 = vmatmul.msk.bf16.gmra.mxu0 %vm2100_vm1, %v4814_v46  ;;  %4242 = vmatmul.msk.bf16.gmra.mxu3 %vm2100_vm1, %v4838_v61  ;;  %v2092_v27 = vpack.c.bf16 %v2028_v14, %v2028_v14  ;;  %v1983_v14 = vadd.f32 %v1919_v4, %v735_v5  ;;  %v1920_v5 = vunpack.c.l.bf16 %v348_v23 }
 0x1aa   : > { %v3006_v44 = vpack.c.b16 %v5045_v12, %v5043_v19  ;;  %v5058_v30 = vunpack.c.l.b16 %v2092_v27 }
 0x1ab   : > { %v5053_v25 = vpop.f32.mrf.mxu3 }
 0x1ac   : > { %4353 = vmatmul.msk.bf16.gmra.mxu2 %vm2100_vm1, %v2998_v13  ;;  %v5056_v53 = vpop.f32.mrf.mxu2  ;;  %v1982_v13 = vadd.f32 %v1918_v60, %v733_v50 }
 0x1ad   : > { %v1770_v48 = vpop.f32.mrf.mxu0 }
 0x1ae   : > { %v2029_v37 = vadd.f32 %v1965_v17, %v1770_v48  ;;  %v4632_v17 = vmov 0.0   ;;  %v2046_v27 = vpack.c.bf16 %v1982_v13, %v1982_v13  ;;  %v5091_v4 = vpop.f32.mrf.mxu1  ;;  %v1921_v13 = vunpack.c.h.bf16 %v348_v23 }
 0x1b0   : > { %v2093_v46 = vpack.c.bf16 %v2029_v37, %v2029_v37  ;;  %v2941_v42 = vunpack.c.l.b16 %v2046_v27  ;;  %v1985_v27 = vadd.f32 %v1921_v13, %v4987_v34 }
 0x1b2   : > { %v5060_v61 = vunpack.c.l.b16 %v2093_v46  ;;  %v2047_v46 = vpack.c.bf16 %v1983_v14, %v1983_v14 }
 0x1b3   : > { %v5062_v52 = vpop.f32.mrf.mxu3 }
 0x1b4   : > { %v5071_v11 = vpop.f32.mrf.mxu2 }
 0x1b5   : > { %v2209_v58 = vpop.f32.mrf.mxu0 }
 0x1b6   : > { %vm2369_vm3 = vcmp.ge.f32.partialorder %v2209_v58, -2.1972246 }
 0x1b8   : > { %4222 = vmatmul.msk.bf16.gmra.mxu0 %vm2100_vm1, %v4783_v33  ;;  %4243 = vmatmul.msk.bf16.gmra.mxu3 %vm2100_vm1, %v4990_v38  ;;  %v4246_v38 = vsel %vm2369_vm3, 1.0, %v4632_v17 }
 0x1bb   : > { %v5073_v2 = vpop.f32.mrf.mxu3 }
 0x1bc   : > { %4354 = vmatmul.msk.bf16.gmra.mxu2 %vm2100_vm1, %v2999_v45  ;;  %v5084_v40 = vpop.f32.mrf.mxu2  ;;  %v2942_v45 = vunpack.c.l.b16 %v2047_v46 }
 0x1bd   : > { %v2211_v33 = vpop.f32.mrf.mxu0 }
 0x1be   : > { %vm2370_vm4 = vcmp.ge.f32.partialorder %v2211_v33, -2.1972246  ;;  %v3000_v60 = vpack.c.b16 %v2942_v45, %v2941_v42  ;;  %v2049_v42 = vpack.c.bf16 %v1985_v27, %v1985_v27 }
 0x1bf   : > { %v4247_v48 = vsel %vm2370_vm4, 1.0, %v4632_v17 }
 0x1c0   : > { %v2561_v37 = vpack.c.bf16 %v4247_v48, %v4246_v38  ;;  %v1984_v48 = vadd.f32 %v1920_v5, %v4975_v24  ;;  %v2944_v0 = vunpack.c.l.b16 %v2049_v42 }
 0x1c2   : > { %4310 = vmatmul.msk.bf16.vlgmr.msra.gmra.mxu1 %vm2593_vm5, %v2561_v37  ;;  %v2048_v46 = vpack.c.bf16 %v1984_v48, %v1984_v48 }
 0x1c3   : > { %v5082_v50 = vpop.f32.mrf.mxu3 }
 0x1c4   : > { %v5096_v38 = vpop.f32.mrf.mxu2 }
 0x1c5   : > { %v2214_v58 = vpop.f32.mrf.mxu0 }
 0x1c6   : > { %vm2371_vm6 = vcmp.ge.f32.partialorder %v2214_v58, -2.1972246  ;;  %v915_v58 = vpop.f32.mrf.mxu1 }
 0x1c8   : > { %4223 = vmatmul.msk.bf16.gmra.mxu0 %vm2100_vm1, %v4875_v15  ;;  %4244 = vmatmul.msk.bf16.gmra.mxu3 %vm2100_vm1, %v4902_v28  ;;  %v4248_v15 = vsel %vm2371_vm6, 1.0, %v4632_v17 }
 0x1cb   : > { %v5093_v14 = vpop.f32.mrf.mxu3 }
 0x1cc   : > { %4355 = vmatmul.msk.bf16.gmra.mxu2 %vm2100_vm1, %v3000_v60  ;;  %v2943_v60 = vunpack.c.l.b16 %v2048_v46  ;;  %v5105_v43 = vpop.f32.mrf.mxu2 }
 0x1cd   : > { %v2216_v33 = vpop.f32.mrf.mxu0 }
 0x1ce   : > { %vm2372_vm7 = vcmp.ge.f32.partialorder %v2216_v33, -2.1972246  ;;  %v3001_v24 = vpack.c.b16 %v2944_v0, %v2943_v60  ;;  %v5114_v13 = vpop.f32.mrf.mxu1 }
 0x1cf   : > { %v4249_v28 = vsel %vm2372_vm7, 1.0, %v4632_v17 }
 0x1d0   : > { %v2562_v37 = vpack.c.bf16 %v4249_v28, %v4248_v15 }
 0x1d2   : > { %4311 = vmatmul.msk.bf16.gmra.mxu1 %vm2593_vm5, %v2562_v37 }
 0x1d3   : > { %v5103_v45 = vpop.f32.mrf.mxu3 }
 0x1d4   : > { %v5118_v15 = vpop.f32.mrf.mxu2 }
 0x1d5   : > { %v2219_v23 = vpop.f32.mrf.mxu0 }
 0x1d6   : > { %vm2373_vm8 = vcmp.ge.f32.partialorder %v2219_v23, -2.1972246  ;;  %v5123_v0 = vpop.f32.mrf.mxu1 }
 0x1d7   : > { %v4250_v33 = vsel %vm2373_vm8, 1.0, %v4632_v17 }
 0x1d8   : > { %4224 = vmatmul.msk.bf16.gmra.mxu0 %vm2100_vm1, %v4830_v57  ;;  %4245 = vmatmul.msk.bf16.gmra.mxu3 %vm2100_vm1, %v4898_v26 }
 0x1db   : > { %v5111_v34 = vpop.f32.mrf.mxu3 }
 0x1dc   : > { %4356 = vmatmul.msk.bf16.gmra.mxu2 %vm2100_vm1, %v3001_v24  ;;  %v5129_v37 = vpop.f32.mrf.mxu2 }
 0x1dd   : > { %v2221_v5 = vpop.f32.mrf.mxu0 }
 0x1de   : > { %vm2374_vm9 = vcmp.ge.f32.partialorder %v2221_v5, -2.1972246  ;;  %v5137_v24 = vpop.f32.mrf.mxu1 }
 0x1df   : > { %v4251_v48 = vsel %vm2374_vm9, 1.0, %v4632_v17 }
 0x1e0   : > { %v2563_v27 = vpack.c.bf16 %v4251_v48, %v4250_v33  ;;  %v354_v48 = vld [vmem:[%s4766_s25 + $0x48] sm:$0xff]  }
 0x1e1   : > { %v1926_v59 = vunpack.c.l.bf16 %v354_v48  ;;  %v1927_v8 = vunpack.c.h.bf16 %v354_v48 }
 0x1e2   : > { %4312 = vmatmul.msk.bf16.gmra.mxu1 %vm2593_vm5, %v2563_v27 }
 0x1e3   : > { %v5121_v57 = vpop.f32.mrf.mxu3 }
 0x1e4   : > { %v5142_v33 = vpop.f32.mrf.mxu2 }
 0x1e5   : > { %v2224_v26 = vpop.f32.mrf.mxu0 }
 0x1e6   : > { %vm2375_vm10 = vcmp.ge.f32.partialorder %v2224_v26, -2.1972246  ;;  %v5147_v27 = vpop.f32.mrf.mxu1 }
 0x1e7   : > { %v4252_v42 = vsel %vm2375_vm10, 1.0, %v4632_v17 }
 0x1e8   : > { %4225 = vmatmul.msk.bf16.gmra.mxu0 %vm2100_vm1, %v4827_v55 }
 0x1eb   : > { %v5127_v28 = vpop.f32.mrf.mxu3 }
 0x1ec   : > { %4357 = vmatmul.msk.bf16.gmra.mxu2 %vm2100_vm1, %v3002_v7 }
 0x1ed   : > { %v2226_v46 = vpop.f32.mrf.mxu0 }
 0x1ee   : > { %vm2376_vm11 = vcmp.ge.f32.partialorder %v2226_v46, -2.1972246  ;;  %v1990_v46 = vadd.f32 %v1926_v59, %v5091_v4 }
 0x1ef   : > { %v4253_v23 = vsel %vm2376_vm11, 1.0, %v4632_v17 }
 0x1f0   : > { %v2564_v60 = vpack.c.bf16 %v4253_v23, %v4252_v42  ;;  %v1991_v42 = vadd.f32 %v1927_v8, %v915_v58  ;;  %v5161_v58 = vpop.f32.mrf.mxu1 }
 0x1f2   : > { %4313 = vmatmul.msk.bf16.gmra.mxu1 %vm2593_vm5, %v2564_v60  ;;  %v2055_v6 = vpack.c.bf16 %v1991_v42, %v1991_v42 }
 0x1f3   : > { %v5140_v55 = vpop.f32.mrf.mxu3 }
 0x1f4   : > { %v2950_v8 = vunpack.c.l.b16 %v2055_v6 }
 0x1f5   : > { %v2229_v5 = vpop.f32.mrf.mxu0 }
 0x1f6   : > { %vm2377_vm12 = vcmp.ge.f32.partialorder %v2229_v5, -2.1972246  ;;  %v2054_v5 = vpack.c.bf16 %v1990_v46, %v1990_v46  ;;  %v1929_v46 = vunpack.c.h.bf16 %v356_v29 }
 0x1f7   : > { %v4254_v23 = vsel %vm2377_vm12, 1.0, %v4632_v17 }
 0x1f8   : > { %4226 = vmatmul.msk.bf16.gmra.mxu0 %vm2100_vm1, %v4791_v35  ;;  %v2949_v59 = vunpack.c.l.b16 %v2054_v5  ;;  %v1993_v6 = vadd.f32 %v1929_v46, %v5010_v51 }
 0x1fa   : > { %v3004_v42 = vpack.c.b16 %v2950_v8, %v2949_v59 }
 0x1fb   : > { %v2334_v7 = vpop.f32.mrf.mxu3 }
 0x1fc   : > { %4358 = vmatmul.msk.bf16.gmra.mxu2 %vm2100_vm1, %v3003_v3  ;;  %vm2419_vm14 = vcmp.ge.f32.partialorder %v2334_v7, -2.1972246  ;;  %v1928_v7 = vunpack.c.l.bf16 %v356_v29 }
 0x1fd   : > { %v2231_v26 = vpop.f32.mrf.mxu0  ;;  %v4296_v1 = vsel %vm2419_vm14, 1.0, %v4632_v17 }
 0x1fe   : > { %vm2378_vm13 = vcmp.ge.f32.partialorder %v2231_v26, -2.1972246 }
 0x1ff   : > { %v4255_v35 = vsel %vm2378_vm13, 1.0, %v4632_v17  ;;  %v5156_v60 = vpop.f32.mrf.mxu2 }
 0x200   : > { %v2565_v48 = vpack.c.bf16 %v4255_v35, %v4254_v23 }
 0x202   : > { %4314 = vmatmul.msk.bf16.gmra.mxu1 %vm2593_vm5, %v2565_v48  ;;  %v1992_v48 = vadd.f32 %v1928_v7, %v5001_v9 }
 0x203   : > { %v2336_v41 = vpop.f32.mrf.mxu3 }
 0x204   : > { %vm2420_vm15 = vcmp.ge.f32.partialorder %v2336_v41, -2.1972246 }
 0x205   : > { %v4297_v3 = vsel %vm2420_vm15, 1.0, %v4632_v17  ;;  %v2234_v4 = vpop.f32.mrf.mxu0 }
 0x206   : > { %v2586_v26 = vpack.c.bf16 %v4297_v3, %v4296_v1  ;;  %vm2379_vm2 = vcmp.ge.f32.partialorder %v2234_v4, -2.1972246  ;;  %v2056_v3 = vpack.c.bf16 %v1992_v48, %v1992_v48  ;;  %v2057_v4 = vpack.c.bf16 %v1993_v6, %v1993_v6 }
 0x207   : > { %v5164_v20 = vpop.f32.mrf.mxu2  ;;  %v4256_v5 = vsel %vm2379_vm2, 1.0, %v4632_v17 }
 0x208   : > { %4227 = vmatmul.msk.bf16.gmra.mxu0 %vm2100_vm1, %v4895_v22  ;;  %4335 = vmatmul.msk.bf16.vlgmr.msra.gmra.mxu3 %vm2593_vm5, %v2586_v26  ;;  %v5174_v22 = vpop.f32.mrf.mxu1  ;;  %v2951_v26 = vunpack.c.l.b16 %v2056_v3  ;;  %v2952_v7 = vunpack.c.l.b16 %v2057_v4 }
 0x20b   : > { %v2339_v23 = vpop.f32.mrf.mxu3 }
 0x20c   : > { %4359 = vmatmul.msk.bf16.gmra.mxu2 %vm2100_vm1, %v3004_v42  ;;  %vm2421_vm4 = vcmp.ge.f32.partialorder %v2339_v23, -2.1972246 }
 0x20d   : > { %v2236_v35 = vpop.f32.mrf.mxu0  ;;  %v4298_v59 = vsel %vm2421_vm4, 1.0, %v4632_v17 }
 0x20e   : > { %vm2380_vm3 = vcmp.ge.f32.partialorder %v2236_v35, -2.1972246  ;;  %v3005_v35 = vpack.c.b16 %v2952_v7, %v2951_v26 }
 0x20f   : > { %v4257_v1 = vsel %vm2380_vm3, 1.0, %v4632_v17  ;;  %v5176_v41 = vpop.f32.mrf.mxu2 }
 0x210   : > { %v2566_v29 = vpack.c.bf16 %v4257_v1, %v4256_v5  ;;  %v5186_v23 = vpop.f32.mrf.mxu1 }
 0x212   : > { %4315 = vmatmul.msk.bf16.gmra.mxu1 %vm2593_vm5, %v2566_v29 }
 0x213   : > { %v2341_v9 = vpop.f32.mrf.mxu3 }
 0x214   : > { %vm2422_vm6 = vcmp.ge.f32.partialorder %v2341_v9, -2.1972246 }
 0x215   : > { %v4299_v51 = vsel %vm2422_vm6, 1.0, %v4632_v17  ;;  %v2239_v8 = vpop.f32.mrf.mxu0 }
 0x216   : > { %v2587_v46 = vpack.c.bf16 %v4299_v51, %v4298_v59  ;;  %vm2381_vm7 = vcmp.ge.f32.partialorder %v2239_v8, -2.1972246 }
 0x217   : > { %v5181_v42 = vpop.f32.mrf.mxu2  ;;  %v4258_v5 = vsel %vm2381_vm7, 1.0, %v4632_v17 }
 0x218   : > { %4228 = vmatmul.msk.bf16.gmra.mxu0 %vm2100_vm1, %v4844_v63  ;;  %4336 = vmatmul.msk.bf16.gmra.mxu3 %vm2593_vm5, %v2587_v46  ;;  %v5195_v4 = vpop.f32.mrf.mxu1 }
 0x21b   : > { %v2344_v48 = vpop.f32.mrf.mxu3 }
 0x21c   : > { %4360 = vmatmul.msk.bf16.gmra.mxu2 %vm2100_vm1, %v3005_v35  ;;  %vm2423_vm9 = vcmp.ge.f32.partialorder %v2344_v48, -2.1972246 }
 0x21d   : > { %v2241_v6 = vpop.f32.mrf.mxu0  ;;  %v4300_v63 = vsel %vm2423_vm9, 1.0, %v4632_v17 }
 0x21e   : > { %vm2382_vm8 = vcmp.ge.f32.partialorder %v2241_v6, -2.1972246 }
 0x21f   : > { %v4259_v1 = vsel %vm2382_vm8, 1.0, %v4632_v17  ;;  %v5191_v29 = vpop.f32.mrf.mxu2 }
 0x220   : > { %v2567_v3 = vpack.c.bf16 %v4259_v1, %v4258_v5  ;;  %v5207_v46 = vpop.f32.mrf.mxu1 }
 0x222   : > { %4316 = vmatmul.msk.bf16.gmra.mxu1 %vm2593_vm5, %v2567_v3 }
 0x223   : > { %v2346_v59 = vpop.f32.mrf.mxu3 }
 0x224   : > { %vm2424_vm10 = vcmp.ge.f32.partialorder %v2346_v59, -2.1972246 }
 0x225   : > { %v4301_v9 = vsel %vm2424_vm10, 1.0, %v4632_v17  ;;  %v2244_v51 = vpop.f32.mrf.mxu0 }
 0x226   : > { %v2588_v8 = vpack.c.bf16 %v4301_v9, %v4300_v63  ;;  %vm2383_vm11 = vcmp.ge.f32.partialorder %v2244_v51, -2.1972246  ;;  %v362_v63 = vld [vmem:[%s4766_s25 + $0x68] sm:$0xff]  }
 0x227   : > { %v5198_v26 = vpop.f32.mrf.mxu2  ;;  %v4260_v48 = vsel %vm2383_vm11, 1.0, %v4632_v17  ;;  %v1934_v51 = vunpack.c.l.bf16 %v362_v63 }
 0x228   : > { %4229 = vmatmul.msk.bf16.gmra.mxu0 %vm2100_vm1, %v4841_v62  ;;  %4337 = vmatmul.msk.bf16.gmra.mxu3 %vm2593_vm5, %v2588_v8  ;;  %v5217_v59 = vpop.f32.mrf.mxu1  ;;  %v1935_v8 = vunpack.c.h.bf16 %v362_v63 }
 0x22b   : > { %v2349_v7 = vpop.f32.mrf.mxu3 }
 0x22c   : > { %4361 = vmatmul.msk.bf16.gmra.mxu2 %vm2100_vm1, %v3006_v44  ;;  %vm2425_vm13 = vcmp.ge.f32.partialorder %v2349_v7, -2.1972246 }
 0x22d   : > { %v2246_v35 = vpop.f32.mrf.mxu0  ;;  %v4302_v1 = vsel %vm2425_vm13, 1.0, %v4632_v17 }
 0x22e   : > { %vm2384_vm12 = vcmp.ge.f32.partialorder %v2246_v35, -2.1972246  ;;  %v5729_v35 = vpack.c.b16 %v4961_v32, %v4959_v31 }
 0x22f   : > { %v4261_v6 = vsel %vm2384_vm12, 1.0, %v4632_v17  ;;  %v5211_v5 = vpop.f32.mrf.mxu2 }
 0x230   : > { %v2568_v62 = vpack.c.bf16 %v4261_v6, %v4260_v48  ;;  %v1998_v6 = vadd.f32 %v1934_v51, %v5114_v13 }
 0x232   : > { %4317 = vmatmul.msk.bf16.gmra.mxu1 %vm2593_vm5, %v2568_v62  ;;  %v1999_v62 = vadd.f32 %v1935_v8, %v5123_v0  ;;  %v2062_v32 = vpack.c.bf16 %v1998_v6, %v1998_v6  ;;  %v1936_v6 = vunpack.c.l.bf16 %v364_v54 }
 0x233   : > { %v2351_v19 = vpop.f32.mrf.mxu3 }
 0x234   : > { %vm2426_vm14 = vcmp.ge.f32.partialorder %v2351_v19, -2.1972246  ;;  %v2957_v8 = vunpack.c.l.b16 %v2062_v32 }
 0x235   : > { %v4303_v12 = vsel %vm2426_vm14, 1.0, %v4632_v17  ;;  %v2249_v44 = vpop.f32.mrf.mxu0  ;;  %vm3691_vm14 = vcmask 1041409  }
 0x236   : > { %v2589_v3 = vpack.c.bf16 %v4303_v12, %v4302_v1  ;;  %vm2385_vm15 = vcmp.ge.f32.partialorder %v2249_v44, -2.1972246 }
 0x237   : > { %v5219_v9 = vpop.f32.mrf.mxu2  ;;  %v4262_v1 = vsel %vm2385_vm15, 1.0, %v4632_v17 }
 0x238   : > { %4230 = vmatmul.msk.bf16.gmra.mxu0 %vm2100_vm1, %v4800_v39  ;;  %4338 = vmatmul.msk.bf16.gmra.mxu3 %vm2593_vm5, %v2589_v3  ;;  %v2063_v3 = vpack.c.bf16 %v1999_v62, %v1999_v62  ;;  %v1937_v62 = vunpack.c.h.bf16 %v364_v54 }
 0x23b   : > { %v2354_v7 = vpop.f32.mrf.mxu3 }
 0x23c   : > { %4362 = vmatmul.msk.bf16.gmra.mxu2 %vm2100_vm1, %v5729_v35  ;;  %vm2427_vm3 = vcmp.ge.f32.partialorder %v2354_v7, -2.1972246  ;;  %v2958_v35 = vunpack.c.l.b16 %v2063_v3 }
 0x23d   : > { %v2251_v48 = vpop.f32.mrf.mxu0  ;;  %v4304_v13 = vsel %vm2427_vm3, 1.0, %v4632_v17  ;;  %vm3693_vm3 = vcmask 1042434  }
 0x23e   : > { %vm2386_vm2 = vcmp.ge.f32.partialorder %v2251_v48, -2.1972246 }
 0x23f   : > { %v4263_v39 = vsel %vm2386_vm2, 1.0, %v4632_v17  ;;  %v2703_v19 = vpop.f32.mrf.mxu1  ;;  %v5232_v12 = vpop.f32.mrf.mxu2 }
 0x240   : > { %v2569_v44 = vpack.c.bf16 %v4263_v39, %v4262_v1  ;;  %v3145_v31 = vadd.f32 %v5156_v60, %v2703_v19  ;;  %v3008_v39 = vpack.c.b16 %v2958_v35, %v2957_v8 }
 0x242   : > { %4318 = vmatmul.msk.bf16.gmra.mxu1 %vm2593_vm5, %v2569_v44  ;;  %v3304_v1 = vmax.f32 %v3145_v31, 0.0 }
 0x243   : > { %v2356_v0 = vpop.f32.mrf.mxu3 }
 0x244   : > { %vm2428_vm4 = vcmp.ge.f32.partialorder %v2356_v0, -2.1972246  ;;  %v3368_v32 = vsel %vm495_vm0, %v3304_v1, 0.0 }
 0x245   : > { %v4305_v63 = vsel %vm2428_vm4, 1.0, %v4632_v17  ;;  %v2254_v51 = vpop.f32.mrf.mxu0 }
 0x246   : > { %v2590_v48 = vpack.c.bf16 %v4305_v63, %v4304_v13  ;;  %vm2387_vm6 = vcmp.ge.f32.partialorder %v2254_v51, -2.1972246 }
 0x247   : > { %v2705_v56 = vpop.f32.mrf.mxu1  ;;  %v5239_v7 = vpop.f32.mrf.mxu2 }
 0x248   : > { %v3147_v60 = vadd.f32 %v5164_v20, %v2705_v56  ;;  %4231 = vmatmul.msk.bf16.gmra.mxu0 %vm2100_vm1, %v4926_v47  ;;  %4339 = vmatmul.msk.bf16.gmra.mxu3 %vm2593_vm5, %v2590_v48  ;;  %v2000_v20 = vadd.f32 %v1936_v6, %v5032_v49  ;;  %v2001_v47 = vadd.f32 %v1937_v62, %v5041_v10  ;;  %v4264_v56 = vsel %vm2387_vm6, 1.0, %v4632_v17  ;;  %v366_v62 = vld [vmem:[%s4766_s25 + $0x78] sm:$0xff]  }
 0x24a   : > { %v3305_v19 = vmax.f32 %v3147_v60, 0.0  ;;  %v2064_v35 = vpack.c.bf16 %v2000_v20, %v2000_v20  ;;  %v2065_v48 = vpack.c.bf16 %v2001_v47, %v2001_v47  ;;  %v4561_v20 = vld [vmem:[%s4766_s25 + $0x90] sm:$0xff]  ;;  %v1938_v47 = vunpack.c.l.bf16 %v366_v62 }
 0x24b   : > { %v2359_v44 = vpop.f32.mrf.mxu3 }
 0x24c   : > { %v3369_v3 = vsel %vm495_vm0, %v3305_v19, 0.0  ;;  %4363 = vmatmul.msk.bf16.gmra.mxu2 %vm2100_vm1, %v3008_v39  ;;  %vm2429_vm8 = vcmp.ge.f32.partialorder %v2359_v44, -2.1972246  ;;  %v2959_v39 = vunpack.c.l.b16 %v2064_v35  ;;  %v2960_v19 = vunpack.c.l.b16 %v2065_v48 }
 0x24d   : > { %v3370_v31 = vadd.f32 %v3369_v3, %v3368_v32  ;;  %v2256_v13 = vpop.f32.mrf.mxu0  ;;  %v4306_v49 = vsel %vm2429_vm8, 1.0, %v4632_v17 }
 0x24e   : > { %vm2388_vm7 = vcmp.ge.f32.partialorder %v2256_v13, -2.1972246 }
 0x24f   : > { %v4265_v54 = vsel %vm2388_vm7, 1.0, %v4632_v17  ;;  %v2708_v0 = vpop.f32.mrf.mxu1  ;;  %v5252_v63 = vpop.f32.mrf.mxu2  ;;  %v3371_v1 = vrot.slane %v3370_v31, 4  ;;  %vm3695_vm7 = vcmask 1043459  }
 0x250   : > { %v2570_v51 = vpack.c.bf16 %v4265_v54, %v4264_v56  ;;  %v3150_v8 = vadd.f32 %v5176_v41, %v2708_v0  ;;  %v1939_v54 = vunpack.c.h.bf16 %v366_v62  ;;  %v3009_v0 = vpack.c.b16 %v2960_v19, %v2959_v39 }
 0x251   : > { %v3372_v56 = vadd.f32 %v3371_v1, %v3370_v31 }
 0x252   : > { %4319 = vmatmul.msk.bf16.gmra.mxu1 %vm2593_vm5, %v2570_v51  ;;  %v3306_v41 = vmax.f32 %v3150_v8, 0.0 }
 0x253   : > { %v2361_v10 = vpop.f32.mrf.mxu3  ;;  %v3373_v8 = vrot.slane %v3372_v56, 2 }
 0x254   : > { %vm2430_vm9 = vcmp.ge.f32.partialorder %v2361_v10, -2.1972246  ;;  %v3377_v35 = vsel %vm495_vm0, %v3306_v41, 0.0 }
 0x255   : > { %v4307_v60 = vsel %vm2430_vm9, 1.0, %v4632_v17  ;;  %v2259_v6 = vpop.f32.mrf.mxu0  ;;  %v3374_v41 = vadd.f32 %v3373_v8, %v3372_v56 }
 0x256   : > { %v2591_v44 = vpack.c.bf16 %v4307_v60, %v4306_v49  ;;  %vm2389_vm10 = vcmp.ge.f32.partialorder %v2259_v6, -2.1972246 }
 0x257   : > { %v2710_v32 = vpop.f32.mrf.mxu1  ;;  %v5259_v3 = vpop.f32.mrf.mxu2  ;;  %v4266_v31 = vsel %vm2389_vm10, 1.0, %v4632_v17  ;;  %vm3697_vm10 = vcmask 1044484  }
 0x258   : > { %v3152_v13 = vadd.f32 %v5181_v42, %v2710_v32  ;;  %4232 = vmatmul.msk.bf16.gmra.mxu0 %vm2100_vm1, %v4561_v20  ;;  %4340 = vmatmul.msk.bf16.gmra.mxu3 %vm2593_vm5, %v2591_v44  ;;  %v2002_v42 = vadd.f32 %v1938_v47, %v5053_v25  ;;  %v2003_v44 = vadd.f32 %v1939_v54, %v5062_v52  ;;  %v386_v52 = vld [vmem:[%s4766_s25 + $0xc8] sm:$0xff]  }
 0x259   : > { %v1959_v56 = vunpack.c.h.bf16 %v386_v52 }
 0x25a   : > { %v3307_v51 = vmax.f32 %v3152_v13, 0.0  ;;  %v2066_v25 = vpack.c.bf16 %v2002_v42, %v2002_v42  ;;  %v2067_v20 = vpack.c.bf16 %v2003_v44, %v2003_v44  ;;  %v1958_v42 = vunpack.c.l.bf16 %v386_v52 }
 0x25b   : > { %v2364_v10 = vpop.f32.mrf.mxu3  ;;  %v2023_v52 = vadd.f32 %v1959_v56, %v5195_v4 }
 0x25c   : > { %v3378_v48 = vsel %vm495_vm0, %v3307_v51, 0.0  ;;  %4364 = vmatmul.msk.bf16.gmra.mxu2 %vm2100_vm1, %v3009_v0  ;;  %vm2431_vm12 = vcmp.ge.f32.partialorder %v2364_v10, -2.1972246  ;;  %v2961_v51 = vunpack.c.l.b16 %v2066_v25 }
 0x25d   : > { %v3379_v49 = vadd.f32 %v3378_v48, %v3377_v35  ;;  %v2261_v60 = vpop.f32.mrf.mxu0  ;;  %v4308_v54 = vsel %vm2431_vm12, 1.0, %v4632_v17  ;;  %v3375_v35 = vrot.slane %v3374_v41, 1 }
 0x25e   : > { %vm2390_vm11 = vcmp.ge.f32.partialorder %v2261_v60, -2.1972246 }
 0x25f   : > { %v3380_v1 = vrot.slane %v3379_v49, 4  ;;  %v4267_v62 = vsel %vm2390_vm11, 1.0, %v4632_v17  ;;  %v2713_v39 = vpop.f32.mrf.mxu1  ;;  %v5272_v6 = vpop.f32.mrf.mxu2 }
 0x260   : > { %v2571_v19 = vpack.c.bf16 %v4267_v62, %v4266_v31  ;;  %v3155_v32 = vadd.f32 %v5191_v29, %v2713_v39  ;;  %v2962_v29 = vunpack.c.l.b16 %v2067_v20  ;;  %v4562_v39 = vld [vmem:[%s4766_s25 + $0x98] sm:$0xff]  ;;  %v2022_v20 = vadd.f32 %v1958_v42, %v5186_v23 }
 0x261   : > { %v3381_v13 = vadd.f32 %v3380_v1, %v3379_v49 }
 0x262   : > { %4320 = vmatmul.msk.bf16.gmra.mxu1 %vm2593_vm5, %v2571_v19  ;;  %v3308_v1 = vmax.f32 %v3155_v32, 0.0  ;;  %v3376_v19 = vadd.f32 %v3375_v35, %v3374_v41  ;;  %v2086_v41 = vpack.c.bf16 %v2022_v20, %v2022_v20  ;;  %v2087_v35 = vpack.c.bf16 %v2023_v52, %v2023_v52  ;;  %v370_v20 = vld [vmem:[%s4766_s25 + $0x88] sm:$0xff]  }
 0x263   : > { %v3382_v47 = vrot.slane %v3381_v13, 2  ;;  %v2366_v0 = vpop.f32.mrf.mxu3 }
 0x264   : > { %vm2432_vm13 = vcmp.ge.f32.partialorder %v2366_v0, -2.1972246  ;;  %v3386_v0 = vsel %vm495_vm0, %v3308_v1, 0.0 }
 0x265   : > { %v3383_v48 = vadd.f32 %v3382_v47, %v3381_v13  ;;  %v4309_v10 = vsel %vm2432_vm13, 1.0, %v4632_v17  ;;  %v2264_v60 = vpop.f32.mrf.mxu0  ;;  %v3010_v13 = vpack.c.b16 %v2962_v29, %v2961_v51  ;;  %vm3699_vm13 = vcmask 1045509  }
 0x266   : > { %v2592_v8 = vpack.c.bf16 %v4309_v10, %v4308_v54  ;;  %vm2391_vm15 = vcmp.ge.f32.partialorder %v2264_v60, -2.1972246 }
 0x267   : > { %v3384_v49 = vrot.slane %v3383_v48, 1  ;;  %v2715_v44 = vpop.f32.mrf.mxu1  ;;  %v5279_v31 = vpop.f32.mrf.mxu2  ;;  %v4268_v23 = vsel %vm2391_vm15, 1.0, %v4632_v17 }
 0x268   : > { %v3157_v62 = vadd.f32 %v5198_v26, %v2715_v44  ;;  %4233 = vmatmul.msk.bf16.gmra.mxu0 %vm2100_vm1, %v4562_v39  ;;  %4341 = vmatmul.msk.bf16.gmra.mxu3 %vm2593_vm5, %v2592_v8  ;;  %v388_v8 = vld [vmem:[%s4766_s25 + $0xd0] sm:$0xff]   ;;  %v2982_v44 = vunpack.c.l.b16 %v2087_v35 }
 0x269   : > { %v3385_v25 = vadd.f32 %v3384_v49, %v3383_v48  ;;  %v2981_v49 = vunpack.c.l.b16 %v2086_v41 }
 0x26a   : > { %v3309_v47 = vmax.f32 %v3157_v62, 0.0  ;;  %v1960_v62 = vunpack.c.l.bf16 %v388_v8 }
 0x26b   : > { %v3692_v54 = vsel %vm3691_vm14, %v3385_v25, %v3376_v19  ;;  %v1961_v25 = vunpack.c.h.bf16 %v388_v8 }
 0x26c   : > { %v3387_v26 = vsel %vm495_vm0, %v3309_v47, 0.0  ;;  %4365 = vmatmul.msk.bf16.gmra.mxu2 %vm2100_vm1, %v3010_v13  ;;  %v3020_v13 = vpack.c.b16 %v2982_v44, %v2981_v49 }
 0x26d   : > { %v3388_v32 = vadd.f32 %v3387_v26, %v3386_v0  ;;  %v2266_v10 = vpop.f32.mrf.mxu0  ;;  %v2025_v35 = vadd.f32 %v1961_v25, %v5118_v15 }
 0x26e   : > { %vm2392_vm2 = vcmp.ge.f32.partialorder %v2266_v10, -2.1972246  ;;  %v2024_v10 = vadd.f32 %v1960_v62, %v5105_v43 }
 0x26f   : > { %v3389_v51 = vrot.slane %v3388_v32, 4  ;;  %v4269_v4 = vsel %vm2392_vm2, 1.0, %v4632_v17  ;;  %v2718_v48 = vpop.f32.mrf.mxu1  ;;  %v5293_v29 = vpop.f32.mrf.mxu2  ;;  %v2089_v15 = vpack.c.bf16 %v2025_v35, %v2025_v35 }
 0x270   : > { %v2572_v60 = vpack.c.bf16 %v4269_v4, %v4268_v23  ;;  %v3160_v42 = vadd.f32 %v5211_v5, %v2718_v48  ;;  %v1942_v23 = vunpack.c.l.bf16 %v370_v20  ;;  %v2088_v43 = vpack.c.bf16 %v2024_v10, %v2024_v10  ;;  %v372_v10 = vld [vmem:[%s4766_s25 + $0x90] sm:$0xff]  }
 0x271   : > { %v3390_v56 = vadd.f32 %v3389_v51, %v3388_v32  ;;  %v4563_v32 = vld [vmem:[%s4766_s25 + $0xa0] sm:$0xff]  ;;  %v1943_v51 = vunpack.c.h.bf16 %v370_v20 }
 0x272   : > { %4321 = vmatmul.msk.bf16.gmra.mxu1 %vm2593_vm5, %v2572_v60  ;;  %v3310_v5 = vmax.f32 %v3160_v42, 0.0  ;;  %v5730_v42 = vpack.c.b16 %v4979_v36, %v4977_v21  ;;  %v2006_v49 = vadd.f32 %v1942_v23, %v5137_v24  ;;  %v2983_v20 = vunpack.c.l.b16 %v2088_v43  ;;  %v4564_v43 = vld [vmem:[%s4766_s25 + $0xa8] sm:$0xff] }
 0x273   : > { %v3391_v1 = vrot.slane %v3390_v56, 2  ;;  %v2007_v44 = vadd.f32 %v1943_v51, %v5147_v27 }
 0x274   : > { %v3395_v60 = vsel %vm495_vm0, %v3310_v5, 0.0  ;;  %v2070_v24 = vpack.c.bf16 %v2006_v49, %v2006_v49 }
 0x275   : > { %v3392_v39 = vadd.f32 %v3391_v1, %v3390_v56  ;;  %v2269_v19 = vpop.f32.mrf.mxu0 }
 0x276   : > { %vm2393_vm4 = vcmp.ge.f32.partialorder %v2269_v19, -2.1972246  ;;  %v2965_v23 = vunpack.c.l.b16 %v2070_v24 }
 0x277   : > { %v3393_v52 = vrot.slane %v3392_v39, 1  ;;  %v2720_v47 = vpop.f32.mrf.mxu1  ;;  %v5299_v0 = vpop.f32.mrf.mxu2 }
 0x278   : > { %v3162_v26 = vadd.f32 %v5219_v9, %v2720_v47  ;;  %4234 = vmatmul.msk.bf16.gmra.mxu0 %vm2100_vm1, %v4563_v32  ;;  %4375 = vmatmul.msk.bf16.vlgmr.msrb.gmra.mxu3 %vm2100_vm1, %v3020_v13  ;;  %v390_v13 = vld [vmem:[%s4766_s25 + $0xd8] sm:$0xff]   ;;  %v2071_v47 = vpack.c.bf16 %v2007_v44, %v2007_v44 }
 0x279   : > { %v3394_v41 = vadd.f32 %v3393_v52, %v3392_v39  ;;  %v2984_v52 = vunpack.c.l.b16 %v2089_v15  ;;  %v1962_v5 = vunpack.c.l.bf16 %v390_v13 }
 0x27a   : > { %v3311_v4 = vmax.f32 %v3162_v26, 0.0  ;;  %v2966_v51 = vunpack.c.l.b16 %v2071_v47 }
 0x27b   : > { %v3694_v48 = vsel %vm3693_vm3, %v3394_v41, %v3692_v54  ;;  %v4270_v54 = vsel %vm2393_vm4, 1.0, %v4632_v17  ;;  %v1963_v41 = vunpack.c.h.bf16 %v390_v13  ;;  %v3021_v35 = vpack.c.b16 %v2984_v52, %v2983_v20 }
 0x27c   : > { %v3396_v9 = vsel %vm495_vm0, %v3311_v4, 0.0  ;;  %4366 = vmatmul.msk.bf16.gmra.mxu2 %vm2100_vm1, %v5730_v42  ;;  %v2026_v49 = vadd.f32 %v1962_v5, %v5111_v34 }
 0x27d   : > { %v3397_v56 = vadd.f32 %v3396_v9, %v3395_v60  ;;  %v2271_v8 = vpop.f32.mrf.mxu0  ;;  %v2027_v44 = vadd.f32 %v1963_v41, %v5121_v57 }
 0x27e   : > { %vm2394_vm6 = vcmp.ge.f32.partialorder %v2271_v8, -2.1972246  ;;  %v1945_v8 = vunpack.c.h.bf16 %v372_v10  ;;  %v2090_v57 = vpack.c.bf16 %v2026_v49, %v2026_v49 }
 0x27f   : > { %v3398_v1 = vrot.slane %v3397_v56, 4  ;;  %v4271_v62 = vsel %vm2394_vm6, 1.0, %v4632_v17  ;;  %v2723_v39 = vpop.f32.mrf.mxu1  ;;  %v5318_v21 = vpop.f32.mrf.mxu2  ;;  %v2091_v20 = vpack.c.bf16 %v2027_v44, %v2027_v44  ;;  %v4565_v44 = vld [vmem:[%s4766_s25 + $0xb0] sm:$0xff] }
 0x280   : > { %v2573_v36 = vpack.c.bf16 %v4271_v62, %v4270_v54  ;;  %v3165_v19 = vadd.f32 %v5232_v12, %v2723_v39  ;;  %v3012_v54 = vpack.c.b16 %v2966_v51, %v2965_v23  ;;  %v2009_v34 = vadd.f32 %v1945_v8, %v5071_v11 }
 0x281   : > { %v3399_v25 = vadd.f32 %v3398_v1, %v3397_v56  ;;  %v1944_v56 = vunpack.c.l.bf16 %v372_v10  ;;  %v2985_v10 = vunpack.c.l.b16 %v2090_v57  ;;  %v2986_v41 = vunpack.c.l.b16 %v2091_v20 }
 0x282   : > { %4322 = vmatmul.msk.bf16.gmra.mxu1 %vm2593_vm5, %v2573_v36  ;;  %v3312_v9 = vmax.f32 %v3165_v19, 0.0 }
 0x283   : > { %v3400_v27 = vrot.slane %v3399_v25, 2  ;;  %v2008_v19 = vadd.f32 %v1944_v56, %v5056_v53  ;;  %v2073_v53 = vpack.c.bf16 %v2009_v34, %v2009_v34 }
 0x285   : > { %v3401_v26 = vadd.f32 %v3400_v27, %v3399_v25  ;;  %v2274_v32 = vpop.f32.mrf.mxu0 }
 0x286   : > { %vm2395_vm8 = vcmp.ge.f32.partialorder %v2274_v32, -2.1972246  ;;  %v2072_v32 = vpack.c.bf16 %v2008_v19, %v2008_v19 }
 0x287   : > { %v3402_v4 = vrot.slane %v3401_v26, 1  ;;  %v2725_v12 = vpop.f32.mrf.mxu1  ;;  %v5324_v60 = vpop.f32.mrf.mxu2 }
 0x288   : > { %v3167_v42 = vadd.f32 %v5239_v7, %v2725_v12  ;;  %4235 = vmatmul.msk.bf16.gmra.mxu0 %vm2100_vm1, %v4564_v43  ;;  %4376 = vmatmul.msk.bf16.gmra.mxu3 %vm2100_vm1, %v3021_v35  ;;  %v3404_v7 = vsel %vm495_vm0, %v3312_v9, 0.0  ;;  %v2967_v12 = vunpack.c.l.b16 %v2072_v32  ;;  %v2968_v9 = vunpack.c.l.b16 %v2073_v53  ;;  %v374_v43 = vld [vmem:[%s4766_s25 + $0x98] sm:$0xff]  }
 0x289   : > { %v3403_v15 = vadd.f32 %v3402_v4, %v3401_v26 }
 0x28a   : > { %v3313_v1 = vmax.f32 %v3167_v42, 0.0  ;;  %v3022_v42 = vpack.c.b16 %v2986_v41, %v2985_v10  ;;  %v394_v41 = vld [vmem:[%s4766_s25 + $0xe8] sm:$0xff]  }
 0x28b   : > { %v3696_v62 = vsel %vm3695_vm7, %v3403_v15, %v3694_v48  ;;  %v5333_v39 = vpop.f32.mrf.mxu3  ;;  %v4272_v48 = vsel %vm2395_vm8, 1.0, %v4632_v17 }
 0x28c   : > { %v3405_v36 = vsel %vm495_vm0, %v3313_v1, 0.0  ;;  %4367 = vmatmul.msk.bf16.gmra.mxu2 %vm2100_vm1, %v3012_v54  ;;  %v1946_v1 = vunpack.c.l.bf16 %v374_v43 }
 0x28d   : > { %v3406_v25 = vadd.f32 %v3405_v36, %v3404_v7  ;;  %v2276_v13 = vpop.f32.mrf.mxu0  ;;  %v3013_v7 = vpack.c.b16 %v2968_v9, %v2967_v12  ;;  %v1966_v9 = vunpack.c.l.bf16 %v394_v41 }
 0x28e   : > { %vm2396_vm9 = vcmp.ge.f32.partialorder %v2276_v13, -2.1972246 }
 0x28f   : > { %v3407_v52 = vrot.slane %v3406_v25, 4  ;;  %v4273_v24 = vsel %vm2396_vm9, 1.0, %v4632_v17  ;;  %v2728_v47 = vpop.f32.mrf.mxu1  ;;  %v5342_v26 = vpop.f32.mrf.mxu2 }
 0x290   : > { %v2574_v27 = vpack.c.bf16 %v4273_v24, %v4272_v48  ;;  %v3170_v23 = vadd.f32 %v5252_v63, %v2728_v47  ;;  %v1947_v63 = vunpack.c.h.bf16 %v374_v43  ;;  %v2010_v48 = vadd.f32 %v1946_v1, %v5073_v2 }
 0x291   : > { %v3408_v5 = vadd.f32 %v3407_v52, %v3406_v25 }
 0x292   : > { %4323 = vmatmul.msk.bf16.gmra.mxu1 %vm2593_vm5, %v2574_v27  ;;  %v3314_v15 = vmax.f32 %v3170_v23, 0.0  ;;  %v2011_v52 = vadd.f32 %v1947_v63, %v5082_v50  ;;  %v2074_v53 = vpack.c.bf16 %v2010_v48, %v2010_v48 }
 0x293   : > { %v3409_v11 = vrot.slane %v3408_v5, 2  ;;  %v5345_v35 = vpop.f32.mrf.mxu3 }
 0x294   : > { %v3413_v34 = vsel %vm495_vm0, %v3314_v15, 0.0  ;;  %v2075_v10 = vpack.c.bf16 %v2011_v52, %v2011_v52  ;;  %v5731_v15 = vpack.c.b16 %v5060_v61, %v5058_v30 }
 0x295   : > { %v3410_v51 = vadd.f32 %v3409_v11, %v3408_v5  ;;  %v2279_v4 = vpop.f32.mrf.mxu0 }
 0x296   : > { %vm2397_vm11 = vcmp.ge.f32.partialorder %v2279_v4, -2.1972246  ;;  %v2969_v4 = vunpack.c.l.b16 %v2074_v53  ;;  %v2970_v12 = vunpack.c.l.b16 %v2075_v10 }
 0x297   : > { %v3411_v56 = vrot.slane %v3410_v51, 1  ;;  %v2730_v8 = vpop.f32.mrf.mxu1  ;;  %v5354_v25 = vpop.f32.mrf.mxu2 }
 0x298   : > { %v3172_v49 = vadd.f32 %v5259_v3, %v2730_v8  ;;  %4236 = vmatmul.msk.bf16.gmra.mxu0 %vm2100_vm1, %v4565_v44  ;;  %4377 = vmatmul.msk.bf16.gmra.mxu3 %vm2100_vm1, %v3022_v42  ;;  %v1967_v42 = vunpack.c.h.bf16 %v394_v41  ;;  %v4566_v8 = vld [vmem:[%s4766_s25 + $0xb8] sm:$0xff]  ;;  %v3014_v44 = vpack.c.b16 %v2970_v12, %v2969_v4 }
 0x299   : > { %v3412_v54 = vadd.f32 %v3411_v56, %v3410_v51 }
 0x29a   : > { %v3315_v36 = vmax.f32 %v3172_v49, 0.0  ;;  %v2031_v1 = vadd.f32 %v1967_v42, %v5217_v59 }
 0x29b   : > { %v3698_v19 = vsel %vm3697_vm10, %v3412_v54, %v3696_v62  ;;  %v5356_v13 = vpop.f32.mrf.mxu3  ;;  %v4274_v62 = vsel %vm2397_vm11, 1.0, %v4632_v17  ;;  %v2030_v54 = vadd.f32 %v1966_v9, %v5207_v46  ;;  %vm3701_vm11 = vcmask 1046534  }
 0x29c   : > { %v3414_v3 = vsel %vm495_vm0, %v3315_v36, 0.0  ;;  %4368 = vmatmul.msk.bf16.gmra.mxu2 %vm2100_vm1, %v3013_v7  ;;  %v2095_v30 = vpack.c.bf16 %v2031_v1, %v2031_v1 }
 0x29d   : > { %v3415_v57 = vadd.f32 %v3414_v3, %v3413_v34  ;;  %v2281_v20 = vpop.f32.mrf.mxu0  ;;  %v2094_v34 = vpack.c.bf16 %v2030_v54, %v2030_v54 }
 0x29e   : > { %vm2398_vm12 = vcmp.ge.f32.partialorder %v2281_v20, -2.1972246  ;;  %v2990_v48 = vunpack.c.l.b16 %v2095_v30 }
 0x29f   : > { %v3416_v24 = vrot.slane %v3415_v57, 4  ;;  %v4275_v47 = vsel %vm2398_vm12, 1.0, %v4632_v17  ;;  %v2733_v27 = vpop.f32.mrf.mxu1  ;;  %v5369_v50 = vpop.f32.mrf.mxu2  ;;  %v2989_v20 = vunpack.c.l.b16 %v2094_v34  ;;  %vm3703_vm12 = vcmask 1047559  }
 0x2a0   : > { %v2575_v5 = vpack.c.bf16 %v4275_v47, %v4274_v62  ;;  %v3175_v4 = vadd.f32 %v5272_v6, %v2733_v27 }
 0x2a1   : > { %v3417_v32 = vadd.f32 %v3416_v24, %v3415_v57  ;;  %v396_v57 = vld [vmem:[%s4766_s25 + $0xf0] sm:$0xff]  }
 0x2a2   : > { %4324 = vmatmul.msk.bf16.gmra.mxu1 %vm2593_vm5, %v2575_v5  ;;  %v1968_v62 = vunpack.c.l.bf16 %v396_v57  ;;  %v1969_v24 = vunpack.c.h.bf16 %v396_v57  ;;  %v3024_v5 = vpack.c.b16 %v2990_v48, %v2989_v20 }
 0x2a3   : > { %v3418_v11 = vrot.slane %v3417_v32, 2  ;;  %v5367_v23 = vpop.f32.mrf.mxu3 }
 0x2a5   : > { %v3419_v2 = vadd.f32 %v3418_v11, %v3417_v32  ;;  %v2284_v51 = vpop.f32.mrf.mxu0  ;;  %v378_v32 = vld [vmem:[%s4766_s25 + $0xa8] sm:$0xff]   ;;  %v4567_v11 = vld [vmem:[%s4766_s25 + $0xc0] sm:$0xff] }
 0x2a6   : > { %vm2399_vm15 = vcmp.ge.f32.partialorder %v2284_v51, -2.1972246  ;;  %v2033_v51 = vadd.f32 %v1969_v24, %v5142_v33  ;;  %v1950_v9 = vunpack.c.l.bf16 %v378_v32  ;;  %v1951_v42 = vunpack.c.h.bf16 %v378_v32  ;;  %v380_v32 = vld [vmem:[%s4766_s25 + $0xb0] sm:$0xff]  }
 0x2a7   : > { %v3420_v43 = vrot.slane %v3419_v2, 1  ;;  %v2735_v56 = vpop.f32.mrf.mxu1  ;;  %v4276_v61 = vsel %vm2399_vm15, 1.0, %v4632_v17  ;;  %v5386_v3 = vpop.f32.mrf.mxu2 }
 0x2a8   : > { %4237 = vmatmul.msk.bf16.gmra.mxu0 %vm2100_vm1, %v4566_v8  ;;  %4378 = vmatmul.msk.bf16.gmra.mxu3 %vm2100_vm1, %v5731_v15  ;;  %v3177_v53 = vadd.f32 %v5279_v31, %v2735_v56  ;;  %v5732_v8 = vpack.c.b16 %v5005_v16, %v5003_v18  ;;  %v2097_v33 = vpack.c.bf16 %v2033_v51, %v2033_v51  ;;  %v3316_v15 = vmax.f32 %v3175_v4, 0.0 }
 0x2a9   : > { %v3421_v49 = vadd.f32 %v3420_v43, %v3419_v2  ;;  %v2032_v2 = vadd.f32 %v1968_v62, %v5129_v37  ;;  %v2014_v27 = vadd.f32 %v1950_v9, %v5161_v58 }
 0x2aa   : > { %v3317_v43 = vmax.f32 %v3177_v53, 0.0  ;;  %v3422_v58 = vsel %vm495_vm0, %v3316_v15, 0.0 }
 0x2ab   : > { %v5380_v63 = vsel %vm3699_vm13, %v3421_v49, %v3698_v19  ;;  %v5382_v7 = vpop.f32.mrf.mxu3  ;;  %v2096_v37 = vpack.c.bf16 %v2032_v2, %v2032_v2  ;;  %v2015_v49 = vadd.f32 %v1951_v42, %v5174_v22  ;;  %v398_v22 = vld [vmem:[%s4766_s25 + $0xf8] sm:$0xff]   ;;  %v3738_v2 = vld [vmem:[%s5720_s6] sm:$0xff] }
 0x2ac   : > { %4369 = vmatmul.msk.bf16.gmra.mxu2 %vm2100_vm1, %v3014_v44  ;;  %v3423_v44 = vsel %vm495_vm0, %v3317_v43, 0.0  ;;  %v1970_v24 = vunpack.c.l.bf16 %v398_v22  ;;  %v1953_v43 = vunpack.c.h.bf16 %v380_v32 }
 0x2ad   : > { %v2286_v36 = vpop.f32.mrf.mxu0  ;;  %v2991_v30 = vunpack.c.l.b16 %v2096_v37 }
 0x2ae   : > { %vm2400_vm2 = vcmp.ge.f32.partialorder %v2286_v36, -2.1972246 }
 0x2af   : > { %v4277_v46 = vsel %vm2400_vm2, 1.0, %v4632_v17  ;;  %v2738_v59 = vpop.f32.mrf.mxu1  ;;  %v5402_v12 = vpop.f32.mrf.mxu2 }
 0x2b0   : > { %v2576_v19 = vpack.c.bf16 %v4277_v46, %v4276_v61  ;;  %v3180_v31 = vadd.f32 %v5293_v29, %v2738_v59  ;;  %v2992_v61 = vunpack.c.l.b16 %v2097_v33  ;;  %v2078_v46 = vpack.c.bf16 %v2014_v27, %v2014_v27 }
 0x2b1   : > { %v2079_v59 = vpack.c.bf16 %v2015_v49, %v2015_v49 }
 0x2b2   : > { %4325 = vmatmul.msk.bf16.gmra.mxu1 %vm2593_vm5, %v2576_v19  ;;  %v3318_v29 = vmax.f32 %v3180_v31, 0.0  ;;  %v3424_v19 = vadd.f32 %v3423_v44, %v3422_v58  ;;  %v3025_v53 = vpack.c.b16 %v2992_v61, %v2991_v30  ;;  %v1952_v31 = vunpack.c.l.bf16 %v380_v32 }
 0x2b3   : > { %v5391_v52 = vpop.f32.mrf.mxu3  ;;  %v2017_v44 = vadd.f32 %v1953_v43, %v5096_v38 }
 0x2b4   : > { %v3431_v57 = vsel %vm495_vm0, %v3318_v29, 0.0 }
 0x2b5   : > { %v2289_v47 = vpop.f32.mrf.mxu0  ;;  %v2081_v38 = vpack.c.bf16 %v2017_v44, %v2017_v44 }
 0x2b6   : > { %vm2401_vm4 = vcmp.ge.f32.partialorder %v2289_v47, -2.1972246  ;;  %v1971_v47 = vunpack.c.h.bf16 %v398_v22 }
 0x2b7   : > { %v2740_v10 = vpop.f32.mrf.mxu1  ;;  %v4278_v54 = vsel %vm2401_vm4, 1.0, %v4632_v17  ;;  %v5422_v48 = vpop.f32.mrf.mxu2  ;;  %v2976_v32 = vunpack.c.l.b16 %v2081_v38 }
 0x2b8   : > { %v3182_v41 = vadd.f32 %v5299_v0, %v2740_v10  ;;  %4238 = vmatmul.msk.bf16.gmra.mxu0 %vm2100_vm1, %v4567_v11  ;;  %4379 = vmatmul.msk.bf16.gmra.mxu3 %vm2100_vm1, %v3024_v5  ;;  %v2973_v10 = vunpack.c.l.b16 %v2078_v46  ;;  %v3425_v11 = vrot.slane %v3424_v19, 4 }
 0x2ba   : > { %v3319_v0 = vmax.f32 %v3182_v41, 0.0  ;;  %v2974_v41 = vunpack.c.l.b16 %v2079_v59  ;;  %v3426_v33 = vadd.f32 %v3425_v11, %v3424_v19 }
 0x2bb   : > { %v5405_v56 = vpop.f32.mrf.mxu3 }
 0x2bc   : > { %4370 = vmatmul.msk.bf16.gmra.mxu2 %vm2100_vm1, %v5732_v8  ;;  %v3432_v16 = vsel %vm495_vm0, %v3319_v0, 0.0  ;;  %v2034_v0 = vadd.f32 %v1970_v24, %v5127_v28  ;;  %v2035_v8 = vadd.f32 %v1971_v47, %v5140_v55  ;;  %v3016_v37 = vpack.c.b16 %v2974_v41, %v2973_v10  ;;  %v382_v47 = vld [vmem:[%s4766_s25 + $0xb8] sm:$0xff]   ;;  %s4582_s25 = sshra.s32 %s3841_s23, 4  ;;  %s4583_s25 = int_to_ptr.hbm [resolvable:$true] %s4582_s25 }
 0x2bd   : > { %v2291_v6 = vpop.f32.mrf.mxu0  ;;  %v3433_v20 = vadd.f32 %v3432_v16, %v3431_v57  ;;  %v3427_v16 = vrot.slane %v3426_v33, 2  ;;  %s4584_s26 = scalar_lea.hbm %s4583_s25, 32  ;;  %p4589_p0 = scmp.lt.s32.totalorder %s4583_s25, %s5722_s8 }
 0x2be   : > { %vm2402_vm6 = vcmp.ge.f32.partialorder %v2291_v6, -2.1972246  ;;  %p4585_p11 = scmp.ne.s32.totalorder %s4583_s25, %s4584_s26  ;;  %p4590_p1 = scmp.lt.s32.totalorder %s4588_s17, %s4584_s26 }
 0x2bf   : > { %v4279_v1 = vsel %vm2402_vm6, 1.0, %v4632_v17  ;;  %v2743_v18 = vpop.f32.mrf.mxu1  ;;  %v3434_v51 = vrot.slane %v3433_v20, 4  ;;  %v5444_v28 = vpop.f32.mrf.mxu2  ;;  %v3428_v19 = vadd.f32 %v3427_v16, %v3426_v33 }
 0x2c0   : > { %v2577_v36 = vpack.c.bf16 %v4279_v1, %v4278_v54  ;;  %v3185_v34 = vadd.f32 %v5318_v21, %v2743_v18  ;;  %v3739_v21 = vld [vmem:[%s5720_s6 + $0x8] sm:$0xff]  ;;  %v2098_v1 = vpack.c.bf16 %v2034_v0, %v2034_v0  ;;  %v2099_v18 = vpack.c.bf16 %v2035_v8, %v2035_v8  ;;  %p4586_p12 = pnand %p4585_p11, %p4715_p5  ;;  %p4591_p2 = por %p4590_p1, %p4589_p0 }
 0x2c1   : > { %3770 = vmatpush.msra.mxu3 %v3739_v21  ;;  %v3435_v6 = vadd.f32 %v3434_v51, %v3433_v20  ;;  %v3429_v10 = vrot.slane %v3428_v19, 1 }
 0x2c2   : > { %4326 = vmatmul.msk.bf16.gmra.mxu1 %vm2593_vm5, %v2577_v36  ;;  %v3320_v9 = vmax.f32 %v3185_v34, 0.0  ;;  %v2993_v46 = vunpack.c.l.b16 %v2098_v1  ;;  %v2994_v59 = vunpack.c.l.b16 %v2099_v18  ;;  %p4587_p13 = pneg %p4586_p12 }
 0x2c3   : > { %v5424_v62 = vpop.f32.mrf.mxu3  ;;  %3771 = vmatpush.msra.mxu3 %v3738_v2  ;;  %v3436_v36 = vrot.slane %v3435_v6, 2  ;;  %v3430_v43 = vadd.f32 %v3429_v10, %v3428_v19 }
 0x2c4   : > { %v3440_v49 = vsel %vm495_vm0, %v3320_v9, 0.0  ;;  %p4592_p3 = pnand %p4591_p2, %p4587_p13 }
 0x2c5   : > { %v2294_v5 = vpop.f32.mrf.mxu0  ;;  %v3437_v57 = vadd.f32 %v3436_v36, %v3435_v6  ;;  %v3702_v44 = vsel %vm3701_vm11, %v3430_v43, %v5380_v63 }
 0x2c6   : > { %vm2403_vm8 = vcmp.ge.f32.partialorder %v2294_v5, -2.1972246 }
 0x2c7   : > { %v2745_v4 = vpop.f32.mrf.mxu1  ;;  %v4280_v34 = vsel %vm2403_vm8, 1.0, %v4632_v17  ;;  %v3438_v41 = vrot.slane %v3437_v57, 1  ;;  %v5453_v11 = vpop.f32.mrf.mxu2 }
 0x2c8   : > { %v3187_v42 = vadd.f32 %v5324_v60, %v2745_v4  ;;  %4380 = vmatmul.msk.bf16.gmra.mxu3 %vm2100_vm1, %v3025_v53  ;;  %v2016_v60 = vadd.f32 %v1952_v31, %v5084_v40  ;;  %v3026_v53 = vpack.c.b16 %v2994_v59, %v2993_v46  ;;  %v1954_v4 = vunpack.c.l.bf16 %v382_v47 }
 0x2c9   : > { %v3439_v8 = vadd.f32 %v3438_v41, %v3437_v57 }
 0x2ca   : > { %v3321_v15 = vmax.f32 %v3187_v42, 0.0  ;;  %v2080_v22 = vpack.c.bf16 %v2016_v60, %v2016_v60  ;;  %v1955_v42 = vunpack.c.h.bf16 %v382_v47 }
 0x2cb   : > { %v5437_v27 = vpop.f32.mrf.mxu3 }
 0x2cc   : > { %v3441_v29 = vsel %vm495_vm0, %v3321_v15, 0.0  ;;  %4371 = vmatmul.msk.bf16.gmra.mxu2 %vm2100_vm1, %v3016_v37  ;;  %v2975_v5 = vunpack.c.l.b16 %v2080_v22  ;;  %v2019_v60 = vadd.f32 %v1955_v42, %v5103_v45 }
 0x2cd   : > { %v3442_v55 = vadd.f32 %v3441_v29, %v3440_v49  ;;  %v2296_v54 = vpop.f32.mrf.mxu0  ;;  %v2018_v29 = vadd.f32 %v1954_v4, %v5093_v14 }
 0x2ce   : > { %vm2404_vm9 = vcmp.ge.f32.partialorder %v2296_v54, -2.1972246  ;;  %v3017_v31 = vpack.c.b16 %v2976_v32, %v2975_v5  ;;  %v3704_v54 = vsel %vm3703_vm12, %v3439_v8, %v3702_v44 }
 0x2cf   : > { %v4281_v30 = vsel %vm2404_vm9, 1.0, %v4632_v17  ;;  %v2748_v61 = vpop.f32.mrf.mxu1  ;;  %v3443_v21 = vrot.slane %v3442_v55, 4 }
 0x2d0   : > { %v2578_v58 = vpack.c.bf16 %v4281_v30, %v4280_v34  ;;  %v3190_v40 = vadd.f32 %v5342_v26, %v2748_v61  ;;  %v5475_v30 = vpop.f32.mrf.mxu2  ;;  %v2082_v61 = vpack.c.bf16 %v2018_v29, %v2018_v29 }
 0x2d1   : > { %v3444_v9 = vadd.f32 %v3443_v21, %v3442_v55  ;;  %v5469_v55 = vld [vmem:[%s5718_s4] ss:$0 sm:$0xff] }
 0x2d2   : > { %4327 = vmatmul.msk.bf16.gmra.mxu1 %vm2593_vm5, %v2578_v58  ;;  %v3322_v2 = vmax.f32 %v3190_v40, 0.0  ;;  %v2083_v58 = vpack.c.bf16 %v2019_v60, %v2019_v60  ;;  %v3730_v40 = vadd.f32 %v5469_v55, %v3704_v54  ;;  %v2977_v57 = vunpack.c.l.b16 %v2082_v61 }
 0x2d3   : > { %v5450_v20 = vpop.f32.mrf.mxu3 }
 0x2d4   : > { %v3449_v33 = vsel %vm495_vm0, %v3322_v2, 0.0  ;;  %v2978_v21 = vunpack.c.l.b16 %v2083_v58  ;;  %v5733_v58 = vld [vmem:[#allocation6_spill] sm:$0xff] }
 0x2d5   : > { %v2299_v24 = vpop.f32.mrf.mxu0 }
 0x2d6   : > { %vm2405_vm15 = vcmp.ge.f32.partialorder %v2299_v24, -2.1972246  ;;  %v3734_v24 = vmul.f32 0.041666668, %v3730_v40  ;;  %v3018_v41 = vpack.c.b16 %v2978_v21, %v2977_v57  ;;  %v5734_v40 = vld [vmem:[#allocation5_spill] sm:$0xff] }
 0x2d7   : > { %v2750_v26 = vpop.f32.mrf.mxu1  ;;  %v4282_v1 = vsel %vm2405_vm15, 1.0, %v4632_v17 }
 0x2d8   : > { %v3192_v51 = vadd.f32 %v5354_v25, %v2750_v26  ;;  %4381 = vmatmul.msk.bf16.gmra.mxu3 %vm2100_vm1, %v3026_v53  ;;  %v3445_v25 = vrot.slane %v3444_v9, 2 }
 0x2da   : > { %v3323_v0 = vmax.f32 %v3192_v51, 0.0  ;;  %v3446_v34 = vadd.f32 %v3445_v25, %v3444_v9  ;;  %v5484_v51 = vpop.f32.mrf.mxu2 }
 0x2db   : > { %v5457_v37 = vpop.f32.mrf.mxu3 }
 0x2dc   : > { %v3450_v15 = vsel %vm495_vm0, %v3323_v0, 0.0  ;;  %4372 = vmatmul.msk.bf16.gmra.mxu2 %vm2100_vm1, %v3017_v31  ;;  %v3447_v46 = vrot.slane %v3446_v34, 1 }
 0x2dd   : > { %v3451_v6 = vadd.f32 %v3450_v15, %v3449_v33  ;;  %v2301_v49 = vpop.f32.mrf.mxu0 }
 0x2de   : > { %vm2406_vm2 = vcmp.ge.f32.partialorder %v2301_v49, -2.1972246  ;;  %v3448_v53 = vadd.f32 %v3447_v46, %v3446_v34 }
 0x2df   : > { %v3452_v18 = vrot.slane %v3451_v6, 4  ;;  %v4283_v16 = vsel %vm2406_vm2, 1.0, %v4632_v17  ;;  %v2753_v36 = vpop.f32.mrf.mxu1 }
 0x2e0   : > { %v2579_v14 = vpack.c.bf16 %v4283_v16, %v4282_v1  ;;  %v3195_v45 = vadd.f32 %v5369_v50, %v2753_v36 }
 0x2e1   : > { %v3453_v63 = vadd.f32 %v3452_v18, %v3451_v6 }
 0x2e2   : > { %4328 = vmatmul.msk.bf16.gmra.mxu1 %vm2593_vm5, %v2579_v14  ;;  %v3324_v5 = vmax.f32 %v3195_v45, 0.0  ;;  %v5497_v60 = vpop.f32.mrf.mxu2 }
 0x2e3   : > { %v3454_v22 = vrot.slane %v3453_v63, 2  ;;  %v5479_v38 = vpop.f32.mrf.mxu3 }
 0x2e4   : > { %v3458_v9 = vsel %vm495_vm0, %v3324_v5, 0.0 }
 0x2e5   : > { %v3455_v59 = vadd.f32 %v3454_v22, %v3453_v63  ;;  %v2304_v19 = vpop.f32.mrf.mxu0  ;;  %v5735_v22 = vpack.c.b16 %v5733_v58, %v5734_v40 }
 0x2e6   : > { %vm2407_vm4 = vcmp.ge.f32.partialorder %v2304_v19, -2.1972246 }
 0x2e7   : > { %v3456_v50 = vrot.slane %v3455_v59, 1  ;;  %v2755_v47 = vpop.f32.mrf.mxu1  ;;  %v4284_v43 = vsel %vm2407_vm4, 1.0, %v4632_v17 }
 0x2e8   : > { %v3197_v32 = vadd.f32 %v5386_v3, %v2755_v47  ;;  %4382 = vmatmul.msk.f32.vlgmr.msra.gmra.mxu3 %vm495_vm0, %v3734_v24 }
 0x2e9   : > { %v3457_v10 = vadd.f32 %v3456_v50, %v3455_v59 }
 0x2ea   : > { %v3325_v26 = vmax.f32 %v3197_v32, 0.0  ;;  %v5507_v19 = vpop.f32.mrf.mxu2 }
 0x2eb   : > { %v3705_v2 = vsel %vm3691_vm14, %v3457_v10, %v3448_v53  ;;  %v5486_v4 = vpop.f32.mrf.mxu3 }
 0x2ec   : > { %v3459_v42 = vsel %vm495_vm0, %v3325_v26, 0.0  ;;  %4373 = vmatmul.msk.bf16.gmra.mxu2 %vm2100_vm1, %v3018_v41 }
 0x2ed   : > { %v3460_v3 = vadd.f32 %v3459_v42, %v3458_v9  ;;  %v2306_v31 = vpop.f32.mrf.mxu0 }
 0x2ee   : > { %vm2408_vm6 = vcmp.ge.f32.partialorder %v2306_v31, -2.1972246 }
 0x2ef   : > { %v3461_v0 = vrot.slane %v3460_v3, 4  ;;  %v4285_v8 = vsel %vm2408_vm6, 1.0, %v4632_v17  ;;  %v2758_v33 = vpop.f32.mrf.mxu1 }
 0x2f0   : > { %v2580_v15 = vpack.c.bf16 %v4285_v8, %v4284_v43  ;;  %v3200_v25 = vadd.f32 %v5402_v12, %v2758_v33 }
 0x2f1   : > { %v3462_v6 = vadd.f32 %v3461_v0, %v3460_v3 }
 0x2f2   : > { %4329 = vmatmul.msk.bf16.gmra.mxu1 %vm2593_vm5, %v2580_v15  ;;  %v3326_v16 = vmax.f32 %v3200_v25, 0.0  ;;  %v5518_v33 = vpop.f32.mrf.mxu2 }
 0x2f3   : > { %v3463_v49 = vrot.slane %v3462_v6, 2  ;;  %v5495_v29 = vpop.f32.mrf.mxu3 }
 0x2f4   : > { %v3467_v63 = vsel %vm495_vm0, %v3326_v16, 0.0 }
 0x2f5   : > { %v3464_v44 = vadd.f32 %v3463_v49, %v3462_v6  ;;  %v2309_v54 = vpop.f32.mrf.mxu0 }
 0x2f6   : > { %vm2409_vm8 = vcmp.ge.f32.partialorder %v2309_v54, -2.1972246 }
 0x2f7   : > { %v3465_v1 = vrot.slane %v3464_v44, 1  ;;  %v2760_v18 = vpop.f32.mrf.mxu1 }
 0x2f8   : > { %v3202_v36 = vadd.f32 %v5422_v48, %v2760_v18  ;;  %v4286_v48 = vsel %vm2409_vm8, 1.0, %v4632_v17 }
 0x2f9   : > { %v3466_v14 = vadd.f32 %v3465_v1, %v3464_v44 }
 0x2fa   : > { %v3327_v45 = vmax.f32 %v3202_v36, 0.0 }
 0x2fb   : > { %v3706_v34 = vsel %vm3693_vm3, %v3466_v14, %v3705_v2  ;;  %v3269_v12 = vpop.f32.mrf.mxu3 }
 0x2fc   : > { %v3468_v61 = vsel %vm495_vm0, %v3327_v45, 0.0  ;;  %4374 = vmatmul.msk.bf16.gmra.mxu2 %vm2100_vm1, %v5735_v22  ;;  %v3270_v50 = vadd.f32 %v3269_v12, %v5333_v39 }
 0x2fd   : > { %v3469_v46 = vadd.f32 %v3468_v61, %v3467_v63  ;;  %v2311_v59 = vpop.f32.mrf.mxu0 }
 0x2fe   : > { %vm2410_vm9 = vcmp.ge.f32.partialorder %v2311_v59, -2.1972246  ;;  %v3354_v10 = vmax.f32 %v3270_v50, 0.0 }
 0x2ff   : > { %v3470_v57 = vrot.slane %v3469_v46, 4  ;;  %v4287_v21 = vsel %vm2410_vm9, 1.0, %v4632_v17  ;;  %v2763_v24 = vpop.f32.mrf.mxu1 }
 0x300   : > { %v2581_v47 = vpack.c.bf16 %v4287_v21, %v4286_v48  ;;  %v3205_v41 = vadd.f32 %v5444_v28, %v2763_v24  ;;  %v3593_v43 = vsel %vm495_vm0, %v3354_v10, 0.0 }
 0x301   : > { %v3471_v5 = vadd.f32 %v3470_v57, %v3469_v46 }
 0x302   : > { %4330 = vmatmul.msk.bf16.gmra.mxu1 %vm2593_vm5, %v2581_v47  ;;  %v3328_v0 = vmax.f32 %v3205_v41, 0.0 }
 0x303   : > { %v3472_v32 = vrot.slane %v3471_v5, 2  ;;  %v3271_v53 = vpop.f32.mrf.mxu3 }
 0x304   : > { %v3272_v26 = vadd.f32 %v3271_v53, %v5345_v35  ;;  %v3476_v49 = vsel %vm495_vm0, %v3328_v0, 0.0 }
 0x305   : > { %v3473_v2 = vadd.f32 %v3472_v32, %v3471_v5  ;;  %v2314_v9 = vpop.f32.mrf.mxu0 }
 0x306   : > { %v3355_v42 = vmax.f32 %v3272_v26, 0.0  ;;  %vm2411_vm1 = vcmp.ge.f32.partialorder %v2314_v9, -2.1972246 }
 0x307   : > { %v3474_v3 = vrot.slane %v3473_v2, 1  ;;  %v2765_v31 = vpop.f32.mrf.mxu1  ;;  %v4288_v18 = vsel %vm2411_vm1, 1.0, %v4632_v17 }
 0x308   : > { %v3594_v39 = vsel %vm495_vm0, %v3355_v42, 0.0  ;;  %v3207_v8 = vadd.f32 %v5453_v11, %v2765_v31 }
 0x309   : > { %v3475_v15 = vadd.f32 %v3474_v3, %v3473_v2  ;;  %v5520_v25 = vadd.f32 %v3594_v39, %v3593_v43 }
 0x30a   : > { %v3329_v28 = vmax.f32 %v3207_v8, 0.0 }
 0x30b   : > { %v3707_v35 = vsel %vm3695_vm7, %v3475_v15, %v3706_v34  ;;  %v3274_v6 = vpop.f32.mrf.mxu3  ;;  %v5529_v34 = vpop.f32.mrf.mxu2 }
 0x30c   : > { %v3477_v44 = vsel %vm495_vm0, %v3329_v28, 0.0  ;;  %v3275_v14 = vadd.f32 %v3274_v6, %v5356_v13 }
 0x30d   : > { %v3478_v54 = vadd.f32 %v3477_v44, %v3476_v49  ;;  %v2316_v1 = vpop.f32.mrf.mxu0 }
 0x30e   : > { %vm2412_vm15 = vcmp.ge.f32.partialorder %v2316_v1, -2.1972246  ;;  %v3356_v58 = vmax.f32 %v3275_v14, 0.0 }
 0x30f   : > { %v3479_v11 = vrot.slane %v3478_v54, 4  ;;  %v4289_v16 = vsel %vm2412_vm15, 1.0, %v4632_v17  ;;  %v2768_v36 = vpop.f32.mrf.mxu1 }
 0x310   : > { %v2582_v45 = vpack.c.bf16 %v4289_v16, %v4288_v18  ;;  %v3602_v21 = vsel %vm495_vm0, %v3356_v58, 0.0  ;;  %v3210_v3 = vadd.f32 %v5475_v30, %v2768_v36 }
 0x311   : > { %v3480_v12 = vadd.f32 %v3479_v11, %v3478_v54 }
 0x312   : > { %4331 = vmatmul.msk.bf16.gmra.mxu1 %vm2593_vm5, %v2582_v45 }
 0x313   : > { %v3481_v63 = vrot.slane %v3480_v12, 2  ;;  %v3276_v61 = vpop.f32.mrf.mxu3  ;;  %v5539_v32 = vpop.f32.mrf.mxu2 }
 0x314   : > { %v3277_v40 = vadd.f32 %v3276_v61, %v5367_v23 }
 0x315   : > { %v3482_v22 = vadd.f32 %v3481_v63, %v3480_v12  ;;  %v2319_v46 = vpop.f32.mrf.mxu0 }
 0x316   : > { %v3357_v59 = vmax.f32 %v3277_v40, 0.0  ;;  %vm2413_vm2 = vcmp.ge.f32.partialorder %v2319_v46, -2.1972246 }
 0x317   : > { %v3483_v48 = vrot.slane %v3482_v22, 1  ;;  %v2770_v57 = vpop.f32.mrf.mxu1  ;;  %v4290_v53 = vsel %vm2413_vm2, 1.0, %v4632_v17 }
 0x318   : > { %v3603_v13 = vsel %vm495_vm0, %v3357_v59, 0.0  ;;  %v3212_v9 = vadd.f32 %v5484_v51, %v2770_v57 }
 0x319   : > { %v3484_v24 = vadd.f32 %v3483_v48, %v3482_v22  ;;  %v5534_v50 = vadd.f32 %v3603_v13, %v3602_v21 }
 0x31a   : > { %v3331_v8 = vmax.f32 %v3212_v9, 0.0 }
 0x31b   : > { %v3279_v47 = vpop.f32.mrf.mxu3  ;;  %v5537_v5 = vsel %vm3697_vm10, %v3484_v24, %v3707_v35  ;;  %v5549_v28 = vpop.f32.mrf.mxu2 }
 0x31c   : > { %v3280_v26 = vadd.f32 %v3279_v47, %v5382_v7  ;;  %v3330_v7 = vmax.f32 %v3210_v3, 0.0 }
 0x31d   : > { %v2321_v23 = vpop.f32.mrf.mxu0 }
 0x31e   : > { %vm2414_vm4 = vcmp.ge.f32.partialorder %v2321_v23, -2.1972246  ;;  %v3358_v31 = vmax.f32 %v3280_v26, 0.0  ;;  %v3485_v1 = vsel %vm495_vm0, %v3330_v7, 0.0 }
 0x31f   : > { %v4291_v10 = vsel %vm2414_vm4, 1.0, %v4632_v17  ;;  %v2773_v41 = vpop.f32.mrf.mxu1 }
 0x320   : > { %v2583_v2 = vpack.c.bf16 %v4291_v10, %v4290_v53  ;;  %v3215_v0 = vadd.f32 %v5497_v60, %v2773_v41  ;;  %v3611_v6 = vsel %vm495_vm0, %v3358_v31, 0.0 }
 0x322   : > { %4332 = vmatmul.msk.bf16.gmra.mxu1 %vm2593_vm5, %v2583_v2  ;;  %v3332_v44 = vmax.f32 %v3215_v0, 0.0 }
 0x323   : > { %v3281_v42 = vpop.f32.mrf.mxu3  ;;  %v5563_v58 = vpop.f32.mrf.mxu2 }
 0x324   : > { %v3282_v43 = vadd.f32 %v3281_v42, %v5391_v52  ;;  %v3486_v52 = vsel %vm495_vm0, %v3331_v8, 0.0  ;;  %v3494_v16 = vsel %vm495_vm0, %v3332_v44, 0.0 }
 0x325   : > { %v2324_v39 = vpop.f32.mrf.mxu0  ;;  %v3487_v11 = vadd.f32 %v3486_v52, %v3485_v1 }
 0x326   : > { %v3359_v15 = vmax.f32 %v3282_v43, 0.0  ;;  %vm2415_vm6 = vcmp.ge.f32.partialorder %v2324_v39, -2.1972246 }
 0x327   : > { %v2775_v35 = vpop.f32.mrf.mxu1  ;;  %v3488_v40 = vrot.slane %v3487_v11, 4 }
 0x328   : > { %v3612_v51 = vsel %vm495_vm0, %v3359_v15, 0.0  ;;  %v3217_v49 = vadd.f32 %v5507_v19, %v2775_v35  ;;  %v4292_v19 = vsel %vm2415_vm6, 1.0, %v4632_v17 }
 0x329   : > { %v5554_v30 = vadd.f32 %v3612_v51, %v3611_v6  ;;  %v3489_v21 = vadd.f32 %v3488_v40, %v3487_v11 }
 0x32a   : > { %v3333_v54 = vmax.f32 %v3217_v49, 0.0 }
 0x32b   : > { %v3284_v60 = vpop.f32.mrf.mxu3  ;;  %v3490_v26 = vrot.slane %v3489_v21, 2 }
 0x32c   : > { %v3495_v18 = vsel %vm495_vm0, %v3333_v54, 0.0  ;;  %v3285_v63 = vadd.f32 %v3284_v60, %v5405_v56 }
 0x32d   : > { %v2326_v36 = vpop.f32.mrf.mxu0  ;;  %v3496_v14 = vadd.f32 %v3495_v18, %v3494_v16  ;;  %v3491_v43 = vadd.f32 %v3490_v26, %v3489_v21 }
 0x32e   : > { %vm2416_vm8 = vcmp.ge.f32.partialorder %v2326_v36, -2.1972246  ;;  %v3360_v59 = vmax.f32 %v3285_v63, 0.0 }
 0x32f   : > { %v4293_v45 = vsel %vm2416_vm8, 1.0, %v4632_v17  ;;  %v2778_v12 = vpop.f32.mrf.mxu1  ;;  %v3497_v22 = vrot.slane %v3496_v14, 4  ;;  %v3492_v44 = vrot.slane %v3491_v43, 1 }
 0x330   : > { %v2584_v61 = vpack.c.bf16 %v4293_v45, %v4292_v19  ;;  %v3220_v48 = vadd.f32 %v5518_v33, %v2778_v12  ;;  %v3620_v56 = vsel %vm495_vm0, %v3360_v59, 0.0  ;;  %v3231_v33 = vpop.f32.mrf.mxu2 }
 0x331   : > { %v3498_v24 = vadd.f32 %v3497_v22, %v3496_v14  ;;  %v3493_v16 = vadd.f32 %v3492_v44, %v3491_v43 }
 0x332   : > { %4333 = vmatmul.msk.bf16.gmra.mxu1 %vm2593_vm5, %v2584_v61  ;;  %v3334_v53 = vmax.f32 %v3220_v48, 0.0 }
 0x333   : > { %v3286_v46 = vpop.f32.mrf.mxu3  ;;  %v3499_v9 = vrot.slane %v3498_v24, 2 }
 0x334   : > { %v3287_v57 = vadd.f32 %v3286_v46, %v5424_v62  ;;  %v3503_v62 = vsel %vm495_vm0, %v3334_v53, 0.0 }
 0x335   : > { %v2329_v13 = vpop.f32.mrf.mxu0  ;;  %v3500_v8 = vadd.f32 %v3499_v9, %v3498_v24 }
 0x336   : > { %v3361_v47 = vmax.f32 %v3287_v57, 0.0  ;;  %vm2417_vm9 = vcmp.ge.f32.partialorder %v2329_v13, -2.1972246 }
 0x337   : > { %v2780_v23 = vpop.f32.mrf.mxu1  ;;  %v4294_v15 = vsel %vm2417_vm9, 1.0, %v4632_v17  ;;  %v3501_v54 = vrot.slane %v3500_v8, 1 }
 0x338   : > { %v3621_v10 = vsel %vm495_vm0, %v3361_v47, 0.0  ;;  %v3222_v41 = vadd.f32 %v5529_v34, %v2780_v23  ;;  %v3234_v36 = vpop.f32.mrf.mxu2 }
 0x339   : > { %v5571_v2 = vadd.f32 %v3621_v10, %v3620_v56 }
 0x33a   : > { %v3335_v42 = vmax.f32 %v3222_v41, 0.0 }
 0x33b   : > { %v3289_v3 = vpop.f32.mrf.mxu3 }
 0x33c   : > { %v3504_v31 = vsel %vm495_vm0, %v3335_v42, 0.0  ;;  %v3290_v6 = vadd.f32 %v3289_v3, %v5437_v27 }
 0x33d   : > { %v3505_v0 = vadd.f32 %v3504_v31, %v3503_v62  ;;  %v2331_v39 = vpop.f32.mrf.mxu0 }
 0x33e   : > { %vm2418_vm1 = vcmp.ge.f32.partialorder %v2331_v39, -2.1972246  ;;  %v3362_v18 = vmax.f32 %v3290_v6, 0.0 }
 0x33f   : > { %v3506_v34 = vrot.slane %v3505_v0, 4  ;;  %v4295_v35 = vsel %vm2418_vm1, 1.0, %v4632_v17  ;;  %v2783_v7 = vpop.f32.mrf.mxu1  ;;  %v3502_v17 = vadd.f32 %v3501_v54, %v3500_v8 }
 0x340   : > { %v2585_v51 = vpack.c.bf16 %v4295_v35, %v4294_v15  ;;  %v3225_v49 = vadd.f32 %v5539_v32, %v2783_v7  ;;  %v3629_v12 = vsel %vm495_vm0, %v3362_v18, 0.0  ;;  %v3236_v23 = vpop.f32.mrf.mxu2 }
 0x341   : > { %v3507_v52 = vadd.f32 %v3506_v34, %v3505_v0 }
 0x342   : > { %4334 = vmatmul.msk.bf16.gmra.mxu1 %vm2593_vm5, %v2585_v51  ;;  %v3336_v32 = vmax.f32 %v3225_v49, 0.0 }
 0x343   : > { %v3508_v60 = vrot.slane %v3507_v52, 2  ;;  %v3291_v1 = vpop.f32.mrf.mxu3 }
 0x344   : > { %v3292_v11 = vadd.f32 %v3291_v1, %v5450_v20  ;;  %v3709_v20 = vsel %vm3699_vm13, %v3493_v16, %v5537_v5  ;;  %v3512_v21 = vsel %vm495_vm0, %v3336_v32, 0.0 }
 0x345   : > { %v3509_v14 = vadd.f32 %v3508_v60, %v3507_v52  ;;  %v3710_v59 = vsel %vm3701_vm11, %v3502_v17, %v3709_v20 }
 0x346   : > { %v3363_v19 = vmax.f32 %v3292_v11, 0.0 }
 0x347   : > { %v3510_v45 = vrot.slane %v3509_v14, 1  ;;  %v2785_v27 = vpop.f32.mrf.mxu1 }
 0x348   : > { %v3630_v63 = vsel %vm495_vm0, %v3363_v19, 0.0  ;;  %v3227_v61 = vadd.f32 %v5549_v28, %v2785_v27  ;;  %v3239_v39 = vpop.f32.mrf.mxu2 }
 0x349   : > { %v3511_v40 = vadd.f32 %v3510_v45, %v3509_v14  ;;  %v5584_v22 = vadd.f32 %v3630_v63, %v3629_v12 }
 0x34a   : > { %v3337_v46 = vmax.f32 %v3227_v61, 0.0 }
 0x34b   : > { %v3294_v48 = vpop.f32.mrf.mxu3  ;;  %v3711_v57 = vsel %vm3703_vm12, %v3511_v40, %v3710_v59 }
 0x34c   : > { %v3513_v13 = vsel %vm495_vm0, %v3337_v46, 0.0  ;;  %v3731_v24 = vadd.f32 %v5469_v55, %v3711_v57  ;;  %v3295_v53 = vadd.f32 %v3294_v48, %v5457_v37 }
 0x34d   : > { %v3514_v47 = vadd.f32 %v3513_v13, %v3512_v21 }
 0x34e   : > { %v3735_v28 = vmul.f32 0.041666668, %v3731_v24  ;;  %v3364_v41 = vmax.f32 %v3295_v53, 0.0 }
 0x34f   : > { %v2788_v56 = vpop.f32.mrf.mxu1  ;;  %v3515_v9 = vrot.slane %v3514_v47, 4 }
 0x350   : > { %v3230_v5 = vadd.f32 %v5563_v58, %v2788_v56  ;;  %4383 = vmatmul.msk.f32.gmra.mxu3 %vm495_vm0, %v3735_v28  ;;  %v3638_v62 = vsel %vm495_vm0, %v3364_v41, 0.0 }
 0x351   : > { %v3516_v8 = vadd.f32 %v3515_v9, %v3514_v47 }
 0x352   : > { %v3338_v31 = vmax.f32 %v3230_v5, 0.0 }
 0x353   : > { %v3296_v10 = vpop.f32.mrf.mxu3 }
 0x354   : > { %v3297_v26 = vadd.f32 %v3296_v10, %v5479_v38  ;;  %v3521_v34 = vsel %vm495_vm0, %v3338_v31, 0.0  ;;  %v3517_v38 = vrot.slane %v3516_v8, 2 }
 0x356   : > { %v3365_v42 = vmax.f32 %v3297_v26, 0.0  ;;  %v3518_v52 = vadd.f32 %v3517_v38, %v3516_v8 }
 0x357   : > { %v2790_v3 = vpop.f32.mrf.mxu1 }
 0x358   : > { %v3639_v43 = vsel %vm495_vm0, %v3365_v42, 0.0  ;;  %v3232_v0 = vadd.f32 %v3231_v33, %v2790_v3  ;;  %v3241_v33 = vpop.f32.mrf.mxu2  ;;  %v3519_v16 = vrot.slane %v3518_v52, 1 }
 0x359   : > { %v5599_v37 = vadd.f32 %v3639_v43, %v3638_v62 }
 0x35a   : > { %v3339_v58 = vmax.f32 %v3232_v0, 0.0  ;;  %v3520_v63 = vadd.f32 %v3519_v16, %v3518_v52 }
 0x35b   : > { %v3299_v15 = vpop.f32.mrf.mxu3 }
 0x35c   : > { %v3522_v35 = vsel %vm495_vm0, %v3339_v58, 0.0  ;;  %v3300_v49 = vadd.f32 %v3299_v15, %v5486_v4 }
 0x35d   : > { %v3523_v7 = vadd.f32 %v3522_v35, %v3521_v34 }
 0x35e   : > { %v3366_v18 = vmax.f32 %v3300_v49, 0.0 }
 0x35f   : > { %v3524_v6 = vrot.slane %v3523_v7, 4  ;;  %v2793_v51 = vpop.f32.mrf.mxu1 }
 0x360   : > { %v3235_v44 = vadd.f32 %v3234_v36, %v2793_v51  ;;  %v3647_v27 = vsel %vm495_vm0, %v3366_v18, 0.0  ;;  %v5610_v36 = vld [vmem:[%s5721_s7] ss:$0 sm:$0xff]  ;;  %v3244_v21 = vpop.f32.mrf.mxu2 }
 0x361   : > { %v3525_v54 = vadd.f32 %v3524_v6, %v3523_v7 }
 0x362   : > { %v3340_v12 = vmax.f32 %v3235_v44, 0.0 }
 0x363   : > { %v3526_v60 = vrot.slane %v3525_v54, 2  ;;  %v3301_v1 = vpop.f32.mrf.mxu3 }
 0x364   : > { %v3302_v11 = vadd.f32 %v3301_v1, %v5495_v29  ;;  %v3530_v59 = vsel %vm495_vm0, %v3340_v12, 0.0 }
 0x365   : > { %v3527_v14 = vadd.f32 %v3526_v60, %v3525_v54 }
 0x366   : > { %v3367_v17 = vmax.f32 %v3302_v11, 0.0 }
 0x367   : > { %v3528_v19 = vrot.slane %v3527_v14, 1  ;;  %v2795_v45 = vpop.f32.mrf.mxu1 }
 0x368   : > { %v3648_v32 = vsel %vm495_vm0, %v3367_v17, 0.0  ;;  %v3237_v4 = vadd.f32 %v3236_v23, %v2795_v45  ;;  %v3246_v5 = vpop.f32.mrf.mxu2 }
 0x369   : > { %v3529_v61 = vadd.f32 %v3528_v19, %v3527_v14  ;;  %v5612_v40 = vadd.f32 %v3648_v32, %v3647_v27 }
 0x36a   : > { %v3341_v29 = vmax.f32 %v3237_v4, 0.0 }
 0x36b   : > { %v3712_v20 = vsel %vm3691_vm14, %v3529_v61, %v3520_v63  ;;  %v3773_v46 = vpop.f32.mrf.mxu3 }
 0x36c   : > { %v3531_v48 = vsel %vm495_vm0, %v3341_v29, 0.0  ;;  %v5618_v57 = vadd.f32 %v5610_v36, %v3773_v46 }
 0x36d   : > { %v3532_v13 = vadd.f32 %v3531_v48, %v3530_v59 }
 0x36e   : > { %3785 = vmax.xlane.f32.xlu2 %v5618_v57 }
 0x36f   : > { %v3533_v24 = vrot.slane %v3532_v13, 4  ;;  %v2798_v47 = vpop.f32.mrf.mxu1 }
 0x370   : > { %v3240_v28 = vadd.f32 %v3239_v39, %v2798_v47  ;;  %v3249_v39 = vpop.f32.mrf.mxu2 }
 0x371   : > { %v3534_v23 = vadd.f32 %v3533_v24, %v3532_v13 }
 0x372   : > { %v3342_v26 = vmax.f32 %v3240_v28, 0.0 }
 0x373   : > { %v3535_v56 = vrot.slane %v3534_v23, 2 }
 0x374   : > { %v3539_v31 = vsel %vm495_vm0, %v3342_v26, 0.0 }
 0x375   : > { %v3536_v53 = vadd.f32 %v3535_v56, %v3534_v23 }
 0x377   : > { %v3537_v10 = vrot.slane %v3536_v53, 1  ;;  %v2800_v41 = vpop.f32.mrf.mxu1 }
 0x378   : > { %v3242_v9 = vadd.f32 %v3241_v33, %v2800_v41  ;;  %v3251_v51 = vpop.f32.mrf.mxu2 }
 0x379   : > { %v3538_v42 = vadd.f32 %v3537_v10, %v3536_v53 }
 0x37a   : > { %v3343_v3 = vmax.f32 %v3242_v9, 0.0 }
 0x37b   : > { %v3713_v62 = vsel %vm3693_vm3, %v3538_v42, %v3712_v20 }
 0x37c   : > { %v3540_v43 = vsel %vm495_vm0, %v3343_v3, 0.0 }
 0x37d   : > { %v3541_v0 = vadd.f32 %v3540_v43, %v3539_v31 }
 0x37f   : > { %v3542_v8 = vrot.slane %v3541_v0, 4  ;;  %v2803_v58 = vpop.f32.mrf.mxu1 }
 0x380   : > { %v3254_v52 = vpop.f32.mrf.mxu2  ;;  %v3245_v11 = vadd.f32 %v3244_v21, %v2803_v58 }
 0x381   : > { %v3543_v15 = vadd.f32 %v3542_v8, %v3541_v0 }
 0x382   : > { %v3344_v45 = vmax.f32 %v3245_v11, 0.0  ;;  %v3596_v11 = vrot.slane %v5520_v25, 4 }
 0x383   : > { %v3544_v34 = vrot.slane %v3543_v15, 2 }
 0x384   : > { %v3548_v46 = vsel %vm495_vm0, %v3344_v45, 0.0  ;;  %v3614_v45 = vrot.slane %v5554_v30, 4 }
 0x385   : > { %v3545_v35 = vadd.f32 %v3544_v34, %v3543_v15 }
 0x387   : > { %v3546_v38 = vrot.slane %v3545_v35, 1  ;;  %v2805_v7 = vpop.f32.mrf.mxu1 }
 0x388   : > { %v3256_v33 = vpop.f32.mrf.mxu2  ;;  %v3247_v1 = vadd.f32 %v3246_v5, %v2805_v7 }
 0x389   : > { %v3547_v6 = vadd.f32 %v3546_v38, %v3545_v35 }
 0x38a   : > { %v3345_v14 = vmax.f32 %v3247_v1, 0.0 }
 0x38b   : > { %v5625_v49 = vsel %vm3695_vm7, %v3547_v6, %v3713_v62 }
 0x38c   : > { %v3549_v63 = vsel %vm495_vm0, %v3345_v14, 0.0 }
 0x38d   : > { %v3550_v59 = vadd.f32 %v3549_v63, %v3548_v46  ;;  %v3632_v46 = vrot.slane %v5584_v22, 4 }
 0x38f   : > { %v2808_v44 = vpop.f32.mrf.mxu1  ;;  %v3551_v23 = vrot.slane %v3550_v59, 4 }
 0x390   : > { %v3250_v16 = vadd.f32 %v3249_v39, %v2808_v44  ;;  %v3259_v4 = vpop.f32.mrf.mxu2 }
 0x391   : > { %v3552_v10 = vadd.f32 %v3551_v23, %v3550_v59 }
 0x392   : > { %v3346_v12 = vmax.f32 %v3250_v16, 0.0 }
 0x393   : > { %v3553_v3 = vrot.slane %v3552_v10, 2 }
 0x394   : > { %v3557_v48 = vsel %vm495_vm0, %v3346_v12, 0.0 }
 0x395   : > { %v3554_v58 = vadd.f32 %v3553_v3, %v3552_v10  ;;  %v3633_v10 = vadd.f32 %v3632_v46, %v5584_v22 }
 0x397   : > { %v2810_v54 = vpop.f32.mrf.mxu1  ;;  %v3555_v44 = vrot.slane %v3554_v58, 1 }
 0x398   : > { %v3252_v18 = vadd.f32 %v3251_v51, %v2810_v54  ;;  %v3261_v5 = vpop.f32.mrf.mxu2 }
 0x399   : > { %v3556_v1 = vadd.f32 %v3555_v44, %v3554_v58 }
 0x39a   : > { %v3347_v19 = vmax.f32 %v3252_v18, 0.0 }
 0x39b   : > { %v3715_v63 = vsel %vm3697_vm10, %v3556_v1, %v5625_v49  ;;  %v3650_v49 = vrot.slane %v5612_v40, 4 }
 0x39c   : > { %v3558_v29 = vsel %vm495_vm0, %v3347_v19, 0.0 }
 0x39d   : > { %v3559_v13 = vadd.f32 %v3558_v29, %v3557_v48  ;;  %v3651_v3 = vadd.f32 %v3650_v49, %v5612_v40 }
 0x39f   : > { %v2813_v60 = vpop.f32.mrf.mxu1  ;;  %v3560_v56 = vrot.slane %v3559_v13, 4 }
 0x3a0   : > { %v3255_v17 = vadd.f32 %v3254_v52, %v2813_v60  ;;  %v3264_v34 = vpop.f32.mrf.mxu2 }
 0x3a1   : > { %v3561_v26 = vadd.f32 %v3560_v56, %v3559_v13  ;;  %v3641_v13 = vrot.slane %v5599_v37, 4 }
 0x3a2   : > { %v3348_v61 = vmax.f32 %v3255_v17, 0.0  ;;  %v3605_v17 = vrot.slane %v5534_v50, 4 }
 0x3a3   : > { %v3562_v43 = vrot.slane %v3561_v26, 2 }
 0x3a4   : > { %v3566_v24 = vsel %vm495_vm0, %v3348_v61, 0.0 }
 0x3a5   : > { %v3563_v35 = vadd.f32 %v3562_v43, %v3561_v26  ;;  %v3634_v43 = vrot.slane %v3633_v10, 2 }
 0x3a7   : > { %v2815_v27 = vpop.f32.mrf.mxu1  ;;  %v3564_v52 = vrot.slane %v3563_v35, 1 }
 0x3a8   : > { %v3257_v32 = vadd.f32 %v3256_v33, %v2815_v27  ;;  %v3266_v27 = vpop.f32.mrf.mxu2 }
 0x3a9   : > { %v3565_v16 = vadd.f32 %v3564_v52, %v3563_v35 }
 0x3aa   : > { %v3349_v20 = vmax.f32 %v3257_v32, 0.0 }
 0x3ab   : > { %v3716_v48 = vsel %vm3699_vm13, %v3565_v16, %v3715_v63 }
 0x3ac   : > { %v3567_v21 = vsel %vm495_vm0, %v3349_v20, 0.0  ;;  %v3597_v20 = vadd.f32 %v3596_v11, %v5520_v25 }
 0x3ad   : > { %v3568_v47 = vadd.f32 %v3567_v21, %v3566_v24  ;;  %v3606_v21 = vadd.f32 %v3605_v17, %v5534_v50 }
 0x3ae   : > { %v3598_v50 = vrot.slane %v3597_v20, 2 }
 0x3af   : > { %v2818_v28 = vpop.f32.mrf.mxu1  ;;  %v3569_v53 = vrot.slane %v3568_v47, 4  ;;  %v3607_v26 = vrot.slane %v3606_v21, 2 }
 0x3b0   : > { %v3260_v41 = vadd.f32 %v3259_v4, %v2818_v28  ;;  %v3623_v4 = vrot.slane %v5571_v2, 4  ;;  %v3615_v28 = vadd.f32 %v3614_v45, %v5554_v30 }
 0x3b1   : > { %v3570_v9 = vadd.f32 %v3569_v53, %v3568_v47 }
 0x3b2   : > { %v3350_v62 = vmax.f32 %v3260_v41, 0.0  ;;  %v3624_v25 = vadd.f32 %v3623_v4, %v5571_v2  ;;  %v3599_v2 = vadd.f32 %v3598_v50, %v3597_v20 }
 0x3b3   : > { %v3571_v0 = vrot.slane %v3570_v9, 2 }
 0x3b4   : > { %v3575_v39 = vsel %vm495_vm0, %v3350_v62, 0.0 }
 0x3b5   : > { %v3572_v7 = vadd.f32 %v3571_v0, %v3570_v9  ;;  %v3642_v9 = vadd.f32 %v3641_v13, %v5599_v37 }
 0x3b7   : > { %v2820_v42 = vpop.f32.mrf.mxu1  ;;  %v3573_v33 = vrot.slane %v3572_v7, 1  ;;  %v3643_v58 = vrot.slane %v3642_v9, 2 }
 0x3b8   : > { %v3262_v31 = vadd.f32 %v3261_v5, %v2820_v42  ;;  %v3616_v42 = vrot.slane %v3615_v28, 2 }
 0x3b9   : > { %v3574_v19 = vadd.f32 %v3573_v33, %v3572_v7  ;;  %v3635_v7 = vadd.f32 %v3634_v43, %v3633_v10 }
 0x3ba   : > { %v3351_v8 = vmax.f32 %v3262_v31, 0.0  ;;  %v3625_v31 = vrot.slane %v3624_v25, 2 }
 0x3bb   : > { %v3717_v47 = vsel %vm3701_vm11, %v3574_v19, %v3716_v48  ;;  %v3636_v1 = vrot.slane %v3635_v7, 1 }
 0x3bc   : > { %v3576_v15 = vsel %vm495_vm0, %v3351_v8, 0.0  ;;  %v3608_v8 = vadd.f32 %v3607_v26, %v3606_v21  ;;  %v3626_v35 = vadd.f32 %v3625_v31, %v3624_v25 }
 0x3bd   : > { %v3577_v38 = vadd.f32 %v3576_v15, %v3575_v39  ;;  %v3617_v39 = vadd.f32 %v3616_v42, %v3615_v28  ;;  %v3652_v15 = vrot.slane %v3651_v3, 2 }
 0x3be   : > { %v3609_v40 = vrot.slane %v3608_v8, 1  ;;  %v3627_v33 = vrot.slane %v3626_v35, 1 }
 0x3bf   : > { %v3578_v6 = vrot.slane %v3577_v38, 4  ;;  %v2823_v51 = vpop.f32.mrf.mxu1  ;;  %v3618_v44 = vrot.slane %v3617_v39, 1  ;;  %v3653_v52 = vadd.f32 %v3652_v15, %v3651_v3 }
 0x3c0   : > { %v3265_v18 = vadd.f32 %v3264_v34, %v2823_v51  ;;  %v3644_v51 = vadd.f32 %v3643_v58, %v3642_v9  ;;  %v3610_v11 = vadd.f32 %v3609_v40, %v3608_v8  ;;  %v3628_v45 = vadd.f32 %v3627_v33, %v3626_v35 }
 0x3c1   : > { %v3579_v54 = vadd.f32 %v3578_v6, %v3577_v38  ;;  %v3600_v38 = vrot.slane %v3599_v2, 1  ;;  %v3654_v17 = vrot.slane %v3653_v52, 1 }
 0x3c2   : > { %v3352_v61 = vmax.f32 %v3265_v18, 0.0  ;;  %v3645_v16 = vrot.slane %v3644_v51, 1 }
 0x3c3   : > { %v3580_v60 = vrot.slane %v3579_v54, 2 }
 0x3c4   : > { %v3584_v56 = vsel %vm495_vm0, %v3352_v61, 0.0  ;;  %v3646_v4 = vadd.f32 %v3645_v16, %v3644_v51  ;;  %v3655_v61 = vadd.f32 %v3654_v17, %v3653_v52 }
 0x3c5   : > { %v3581_v14 = vadd.f32 %v3580_v60, %v3579_v54  ;;  %v3601_v60 = vadd.f32 %v3600_v38, %v3599_v2 }
 0x3c7   : > { %v3582_v12 = vrot.slane %v3581_v14, 1  ;;  %v2825_v32 = vpop.f32.mrf.mxu1 }
 0x3c8   : > { %v3267_v29 = vadd.f32 %v3266_v27, %v2825_v32 }
 0x3c9   : > { %v3583_v59 = vadd.f32 %v3582_v12, %v3581_v14  ;;  %v3619_v14 = vadd.f32 %v3618_v44, %v3617_v39  ;;  %v3637_v12 = vadd.f32 %v3636_v1, %v3635_v7 }
 0x3ca   : > { %v3353_v24 = vmax.f32 %v3267_v29, 0.0 }
 0x3cb   : > { %v3718_v23 = vsel %vm3703_vm12, %v3583_v59, %v3717_v47 }
 0x3cc   : > { %v3585_v53 = vsel %vm495_vm0, %v3353_v24, 0.0  ;;  %v3732_v5 = vadd.f32 %v5469_v55, %v3718_v23 }
 0x3cd   : > { %v3586_v41 = vadd.f32 %v3585_v53, %v3584_v56 }
 0x3ce   : > { %v3736_v30 = vmul.f32 0.041666668, %v3732_v5 }
 0x3cf   : > { %v3587_v62 = vrot.slane %v3586_v41, 4 }
 0x3d0   : > { %4384 = vmatmul.msk.f32.gmra.mxu3 %vm495_vm0, %v3736_v30 }
 0x3d1   : > { %v3588_v0 = vadd.f32 %v3587_v62, %v3586_v41 }
 0x3d3   : > { %v3589_v22 = vrot.slane %v3588_v0, 2  ;;  %v3776_v34 = vpop.f32.mrf.mxu3 }
 0x3d4   : > { %v3777_v37 = vadd.f32 %v5610_v36, %v3776_v34 }
 0x3d5   : > { %v3590_v6 = vadd.f32 %v3589_v22, %v3588_v0 }
 0x3d6   : > { %3787 = vmax.xlane.f32.xlu0 %v3777_v37 }
 0x3d7   : > { %v3591_v54 = vrot.slane %v3590_v6, 1 }
 0x3d9   : > { %v3592_v18 = vadd.f32 %v3591_v54, %v3590_v6 }
 0x3db   : > { %v3719_v19 = vsel %vm3691_vm14, %v3601_v60, %v3592_v18 }
 0x3dc   : > { %v3720_v27 = vsel %vm3693_vm3, %v3610_v11, %v3719_v19 }
 0x3dd   : > { %v3721_v32 = vsel %vm3695_vm7, %v3619_v14, %v3720_v27 }
 0x3de   : > { %v3722_v63 = vsel %vm3697_vm10, %v3628_v45, %v3721_v32 }
 0x3df   : > { %v3723_v29 = vsel %vm3699_vm13, %v3637_v12, %v3722_v63 }
 0x3e0   : > { %v3724_v20 = vsel %vm3701_vm11, %v3646_v4, %v3723_v29 }
 0x3e1   : > { %v3786_v46 = vpop.xlane.xlu2 %3785  ;;  %v3725_v59 = vsel %vm3703_vm12, %v3655_v61, %v3724_v20 }
 0x3e2   : > { %v3793_v48 = vsub.f32 %v5618_v57, %v3786_v46  ;;  %v3733_v21 = vadd.f32 %v5469_v55, %v3725_v59 }
 0x3e4   : > { %v3797_v13 = vmul.f32 1.442695, %v3793_v48  ;;  %v3737_v24 = vmul.f32 0.041666668, %v3733_v21 }
 0x3e6   : > { %4545 = vpow2.f32 %v3797_v13  ;;  %4385 = vmatmul.msk.f32.gmra.mxu3 %vm495_vm0, %v3737_v24 }
 0x3ec   : > { %v4546_v47 = vpop.eup %4545 }
 0x3ed   : > { %3805 = vadd.xlane.f32.xlu2 %v4546_v47 }
 0x449   : > { %v3788_v25 = vpop.xlane.xlu0 %3787 }
 0x44a   : > { %v3794_v57 = vsub.f32 %v3777_v37, %v3788_v25 }
 0x44c   : > { %v3799_v53 = vmul.f32 1.442695, %v3794_v57 }
 0x453   : > { %v3779_v28 = vpop.f32.mrf.mxu3 }
 0x454   : > { %v3780_v49 = vadd.f32 %v5610_v36, %v3779_v28 }
 0x456   : > { %3789 = vmax.xlane.f32.xlu1 %v3780_v49 }
 0x460   : > { %v3806_v23 = vpop.xlane.xlu2 %3805 }
 0x461   : > { %4547 = vrcp.f32 %v3806_v23 }
 0x462   : > { %4549 = vpow2.f32 %v3799_v53 }
 0x467   : > { %v4548_v56 = vpop.eup %4547 }
 0x468   : > { %v3817_v55 = vmul.f32 %v4548_v56, %v4546_v47  ;;  %v4550_v10 = vpop.eup %4549 }
 0x469   : > { %v3782_v5 = vpop.f32.mrf.mxu3 }
 0x46a   : > { %3821 = vst [vmem:[%s5673_s18] sm:$0xff] %v3817_v55  ;;  %v3783_v50 = vadd.f32 %v5610_v36, %v3782_v5 }
 0x46c   : > { %3791 = vmax.xlane.f32.xlu1 %v3783_v50 }
 0x474   : > { %3807 = vadd.xlane.f32.xlu1 %v4550_v10 }
 0x4c9   : > { %v3790_v41 = vpop.xlane.xlu1 %3789 }
 0x4ca   : > { %v3795_v26 = vsub.f32 %v3780_v49, %v3790_v41 }
 0x4cc   : > { %v3801_v9 = vmul.f32 1.442695, %v3795_v26 }
 0x4ce   : > { %4551 = vpow2.f32 %v3801_v9 }
 0x4d4   : > { %v4552_v30 = vpop.eup %4551 }
 0x4d5   : > { %3809 = vadd.xlane.f32.xlu2 %v4552_v30 }
 0x4df   : > { %v3792_v42 = vpop.xlane.xlu1 %3791 }
 0x4e0   : > { %v3796_v3 = vsub.f32 %v3783_v50, %v3792_v42 }
 0x4e2   : > { %v3803_v62 = vmul.f32 1.442695, %v3796_v3 }
 0x4e4   : > { %4553 = vpow2.f32 %v3803_v62 }
 0x4e7   : > { %v3808_v31 = vpop.xlane.xlu1 %3807 }
 0x4e8   : > { %4555 = vrcp.f32 %v3808_v31 }
 0x4ea   : > { %v4554_v36 = vpop.eup %4553 }
 0x4eb   : > { %3811 = vadd.xlane.f32.xlu1 %v4554_v36 }
 0x4ee   : > { %v4556_v2 = vpop.eup %4555 }
 0x4ef   : > { %v3818_v43 = vmul.f32 %v4556_v2, %v4550_v10 }
 0x4f1   : > { %3822 = vst [vmem:[%s5673_s18 + $0x8] sm:$0xff] %v3818_v43 }
 0x548   : > { %v3810_v0 = vpop.xlane.xlu2 %3809 }
 0x549   : > { %4557 = vrcp.f32 %v3810_v0 }
 0x54f   : > { %v4558_v8 = vpop.eup %4557 }
 0x550   : > { %v3819_v58 = vmul.f32 %v4558_v8, %v4552_v30 }
 0x552   : > { %3823 = vst [vmem:[%s5673_s18 + $0x10] sm:$0xff] %v3819_v58 }
 0x55e   : > { %v3812_v39 = vpop.xlane.xlu1 %3811 }
 0x55f   : > { %4559 = vrcp.f32 %v3812_v39 }
 0x565   : > { %v4560_v15 = vpop.eup %4559 }
 0x566   : > { %v3820_v22 = vmul.f32 %v4560_v15, %v4554_v36 }
 0x568   : > { %3824 = vst [vmem:[%s5673_s18 + $0x18] sm:$0xff] %v3820_v22 }
 0x569   : > { %4595 = shalt.err (!%p4592_p3)
}
 0x56a   : > { %s4633_s12 = smov 128   ;;  %s4634_s18 = smov 8  }
 0x56b   : > { %4464 = dma.vmem_to_hbm [thread:$0]  (%p4715_p5), %s3839_s22, 512, %s3841_s23, %s3826_s24, %s4633_s12, %s4633_s12, %s4634_s18  }
 0x56c PF: > { %p4470_p4 = scmp.ge.s32.totalorder %s4630_s30, 2  ;;  %s3855_s20 = sand.u32 1, %s4618_s27  }
 0x56d   : > { %s3856_s21 = scalar_lea.sflag [#allocation3], %s3855_s20 }
 0x56e   : > { %p4467_p7 = pnand %p4470_p4, %p4719_p6 }
 0x570   : > { %p4468_p8 = pneg %p4467_p7 }
 0x572   : > { %4613 = dma.done.wait (%p4468_p8), %s3856_s21, 512  }
 0x573   : > { %4615 = vsyncadd (%p4468_p8), %s3856_s21, 4294966784  ;;  %p18_p9 = scmp.ge.s32.totalorder %s4703_s11, 4   ;;  %s5736_s27 = smov %s4622_s28 }
 0x574   : > { %s5737_s28 = smov %s4626_s29  ;;  %s5738_s29 = smov %s4713_s14 }
 0x575   : > { %s5739_s30 = smov %s4703_s11  ;;  %20 = sbr.rel (!%p18_p9) target bundleno = 3 (0x3), region = 90 }
 0x57a   :  { %3862 = vsyncpa [#allocation3], 1 }
 0x57b   :  { %3864 = vsyncpa [#allocation3 + $0x1], 1 }

</bundles_post_ra>
